<compile_context>
chip_gen: v6e
topology: v6e:2x2x1
jax: 0.10.0
libtpu: 0.0.40
codegen_flags: <defaults>
</compile_context>

<pallas_src>
import functools

import jax
import jax.numpy as jnp
from jax.experimental import pallas as pl
from jax.experimental.pallas import tpu as pltpu


# ----------------------------------------------------------------------------
# Kernel
# ----------------------------------------------------------------------------
def mlp_kernel(x_ref, w1_ref, wpk_ref, w5_ref, bpk_ref, o_ref):
    # x_ref  : (T, 32)     f32   input tile, natural layout (batch on sublanes)
    # w1_ref : (64, 32)    bf16  W1 [out, in]
    # wpk_ref: (3, 64, 64) bf16  W2, W3, W4 [out, in]
    # w5_ref : (8, 64)     bf16  row 0 = W5, rows 1..7 zero
    # bpk_ref: (64, 5)     f32   b1..b4 in cols 0..3, b5 at [0, 4]
    # o_ref  : (1, T)      f32   lane-dense output row (batch on lanes)
    x = x_ref[...].astype(jnp.bfloat16)                          # (T, 32)

    # Layer 1: (64,32) @ (32,T) -> (64,T); transposed RHS (flash-attn q@k.T
    # pattern) puts the batch on lanes for the rest of the network.
    h = jnp.dot(w1_ref[...], x.T, preferred_element_type=jnp.float32)
    h = jnp.maximum(h + bpk_ref[:, 0:1], 0.0)                    # f32 VPU math

    # Layers 2..4: (64,64) @ (64,T) -> (64,T)
    for layer in range(3):
        h = jnp.dot(wpk_ref[layer], h.astype(jnp.bfloat16),
                    preferred_element_type=jnp.float32)
        h = jnp.maximum(h + bpk_ref[:, layer + 1:layer + 2], 0.0)

    # Layer 5: (8,64) @ (64,T) -> (8,T); only row 0 is meaningful.
    out = jnp.dot(w5_ref[...], h.astype(jnp.bfloat16),
                  preferred_element_type=jnp.float32)
    o_ref[...] = (out[0:1, :] + bpk_ref[0:1, 4:5]).astype(o_ref.dtype)


# ----------------------------------------------------------------------------
# Param packing
# ----------------------------------------------------------------------------
def pack_params(params, compute_dtype=jnp.bfloat16):
    """Pack PyTorch-layout params (W:[out,in], b:[out]) into 4 kernel arrays."""
    w1 = params["w1"].astype(compute_dtype)                              # (64, 32)
    wpk = jnp.stack([params["w2"], params["w3"], params["w4"]]
                    ).astype(compute_dtype)                              # (3, 64, 64)
    w5 = (jnp.zeros((8, 64), jnp.float32)
          .at[0:1, :].set(params["w5"])).astype(compute_dtype)           # (8, 64)

    bpk = jnp.zeros((64, 5), jnp.float32)
    bpk = bpk.at[:, 0].set(params["b1"])
    bpk = bpk.at[:, 1].set(params["b2"])
    bpk = bpk.at[:, 2].set(params["b3"])
    bpk = bpk.at[:, 3].set(params["b4"])
    bpk = bpk.at[0, 4].set(params["b5"][0])                              # (64, 5)
    return w1, wpk, w5, bpk


# ----------------------------------------------------------------------------
# Wrapper
# ----------------------------------------------------------------------------
def _round_up(x, m):
    return ((x + m - 1) // m) * m


@functools.partial(jax.jit, static_argnames=("tile_n",))
def mlp_forward(x, params, *, tile_n=2048):
    """x: (N, 32) float32, params in PyTorch layout. Returns (N, 1) float32."""
    N, d_in = x.shape
    assert d_in == 32

    # Big tiles amortize the ~0.35 us per-grid-step overhead; cap the tile so
    # the parallel grid axis keeps >= 2 steps when possible (v7x megacore).
    tile = max(128, min(_round_up(tile_n, 128), _round_up(pl.cdiv(N, 2), 128)))
    n_blocks = pl.cdiv(N, tile)

    w1, wpk, w5, bpk = pack_params(params)

    def whole(arr):
        # grid-invariant block: whole array, same block index every step
        return pl.BlockSpec(arr.shape, lambda i: (0,) * arr.ndim)

    flops = 2 * N * (32 * 64 + 3 * 64 * 64 + 8 * 64)
    bytes_accessed = (N * 32 * 4                       # x f32 in
                      + N * 4                          # out f32
                      + w1.size * 2 + wpk.size * 2 + w5.size * 2 + bpk.size * 4)

    out = pl.pallas_call(
        mlp_kernel,
        out_shape=jax.ShapeDtypeStruct((1, N), jnp.float32),
        grid_spec=pltpu.PrefetchScalarGridSpec(
            num_scalar_prefetch=0,
            grid=(n_blocks,),
            in_specs=[
                pl.BlockSpec((tile, 32), lambda i: (i, 0)),   # natural x tile
                whole(w1),
                whole(wpk),
                whole(w5),
                whole(bpk),
            ],
            out_specs=pl.BlockSpec((1, tile), lambda i: (0, i)),
        ),
        compiler_params=pltpu.CompilerParams(
            dimension_semantics=("parallel",),
        ),
        cost_estimate=pl.CostEstimate(
            flops=flops, transcendentals=0, bytes_accessed=bytes_accessed),
    )(x, w1, wpk, w5, bpk)

    # (1, N) lane-dense slab -> (N, 1) column (reshape of a size-1 dim).
    return out.reshape(N, 1)


# ----------------------------------------------------------------------------
# Params / reference
# ----------------------------------------------------------------------------
def init_params(key):
    """PyTorch nn.Linear layout: W [out,in], b [out], U(-1/sqrt(fan_in), +)."""
    dims = [(32, 64), (64, 64), (64, 64), (64, 64), (64, 1)]
    params = {}
    keys = jax.random.split(key, 2 * len(dims))
    for idx, (fan_in, fan_out) in enumerate(dims):
        bound = 1.0 / jnp.sqrt(jnp.float32(fan_in))
        wk, bk = keys[2 * idx], keys[2 * idx + 1]
        params[f"w{idx + 1}"] = jax.random.uniform(
            wk, (fan_out, fan_in), jnp.float32, minval=-bound, maxval=bound)
        params[f"b{idx + 1}"] = jax.random.uniform(
            bk, (fan_out,), jnp.float32, minval=-bound, maxval=bound)
    return params


def mlp_reference(x, params, *, mirror_dtype=jnp.bfloat16):
    """Pure-JAX reference mirroring the kernel's bf16 dot-input quantization."""
    q = lambda a: a.astype(mirror_dtype).astype(jnp.float32)
    h = q(x)
    for i in range(1, 5):
        h = jnp.maximum(
            jnp.dot(h, q(params[f"w{i}"]).T, precision="highest")
            + params[f"b{i}"], 0.0)
        h = q(h)
    return jnp.dot(h, q(params["w5"]).T, precision="highest") + params["b5"]


# ----------------------------------------------------------------------------
# Smoke test
# ----------------------------------------------------------------------------
if __name__ == "__main__":
    key = jax.random.PRNGKey(0)
    pkey, xkey = jax.random.split(key)

    params = init_params(pkey)
    N = 1000                        # not a tile multiple: exercises the masked
    x = jax.random.normal(xkey, (N, 32), jnp.float32)   # partial last block

    out = mlp_forward(x, params)    # tile capped to 512 -> 2 parallel steps
    out = jax.block_until_ready(out)

    ref = mlp_reference(x, params)
    assert out.shape == (N, 1)
    assert jnp.allclose(out, ref, atol=1e-3, rtol=1e-3), "mismatch vs. reference"

    print("KERNEL_OK")
</pallas_src>

<mosaic_0001>
module attributes {stable_mosaic.version = 11 : i64} {
  func.func @mlp_kernel(%arg0: i32, %arg1: memref<512x32xf32, #tpu.memory_space<vmem>>, %arg2: memref<64x32xbf16, #tpu.memory_space<vmem>>, %arg3: memref<3x64x64xbf16, #tpu.memory_space<vmem>>, %arg4: memref<8x64xbf16, #tpu.memory_space<vmem>>, %arg5: memref<64x5xf32, #tpu.memory_space<vmem>>, %arg6: memref<1x512xf32, #tpu.memory_space<vmem>>) attributes {dimension_semantics = [#tpu.dimension_semantics<parallel>], iteration_bounds = array<i64: 2>, scalar_prefetch = 0 : i64, scratch_operands = 0 : i64, tpu.core_type = #tpu.core_type<tc>, window_params = [{transform_indices = @transform_0, window_bounds = array<i64: 512, 32>}, {pipeline_mode = #tpu.pipeline_mode<synchronous>, transform_indices = @transform_1, window_bounds = array<i64: 64, 32>}, {pipeline_mode = #tpu.pipeline_mode<synchronous>, transform_indices = @transform_2, window_bounds = array<i64: 3, 64, 64>}, {pipeline_mode = #tpu.pipeline_mode<synchronous>, transform_indices = @transform_3, window_bounds = array<i64: 8, 64>}, {pipeline_mode = #tpu.pipeline_mode<synchronous>, transform_indices = @transform_4, window_bounds = array<i64: 64, 5>}, {transform_indices = @transform_5, window_bounds = array<i64: 1, 512>}]} {
    %c0 = arith.constant 0 : index
    %c0_0 = arith.constant 0 : index
    %0 = vector.load %arg1[%c0, %c0_0] : memref<512x32xf32, #tpu.memory_space<vmem>>, vector<512x32xf32>
    %1 = arith.truncf %0 : vector<512x32xf32> to vector<512x32xbf16>
    %c0_1 = arith.constant 0 : index
    %c0_2 = arith.constant 0 : index
    %2 = vector.load %arg2[%c0_1, %c0_2] : memref<64x32xbf16, #tpu.memory_space<vmem>>, vector<64x32xbf16>
    %3 = tpu.transpose %1, [1, 0] : vector<512x32xbf16> -> vector<32x512xbf16>
    %cst = arith.constant dense<0.000000e+00> : vector<64x512xf32>
    %4 = tpu.matmul %2, %3, %cst {dimension_numbers = #tpu.dot_dimension_numbers<[1], [0], [0], [1], [0, 0, 1, 1], [], []>} : vector<64x32xbf16>, vector<32x512xbf16>, vector<64x512xf32> -> vector<64x512xf32>
    %c0_3 = arith.constant 0 : index
    %c0_4 = arith.constant 0 : index
    %5 = vector.load %arg5[%c0_3, %c0_4] : memref<64x5xf32, #tpu.memory_space<vmem>>, vector<64x1xf32>
    %6 = vector.broadcast %5 : vector<64x1xf32> to vector<64x512xf32>
    %7 = arith.addf %4, %6 : vector<64x512xf32>
    %cst_5 = arith.constant 0.000000e+00 : f32
    %8 = vector.broadcast %cst_5 : f32 to vector<64x512xf32>
    %9 = arith.maximumf %7, %8 : vector<64x512xf32>
    %c0_6 = arith.constant 0 : index
    %c0_7 = arith.constant 0 : index
    %c0_8 = arith.constant 0 : index
    %10 = vector.load %arg3[%c0_6, %c0_7, %c0_8] : memref<3x64x64xbf16, #tpu.memory_space<vmem>>, vector<1x64x64xbf16>
    %11 = vector.shape_cast %10 : vector<1x64x64xbf16> to vector<64x64xbf16>
    %12 = arith.truncf %9 : vector<64x512xf32> to vector<64x512xbf16>
    %cst_9 = arith.constant dense<0.000000e+00> : vector<64x512xf32>
    %13 = tpu.matmul %11, %12, %cst_9 {dimension_numbers = #tpu.dot_dimension_numbers<[1], [0], [0], [1], [0, 0, 1, 1], [], []>} : vector<64x64xbf16>, vector<64x512xbf16>, vector<64x512xf32> -> vector<64x512xf32>
    %c0_10 = arith.constant 0 : index
    %c1 = arith.constant 1 : index
    %14 = vector.load %arg5[%c0_10, %c1] : memref<64x5xf32, #tpu.memory_space<vmem>>, vector<64x1xf32>
    %15 = vector.broadcast %14 : vector<64x1xf32> to vector<64x512xf32>
    %16 = arith.addf %13, %15 : vector<64x512xf32>
    %cst_11 = arith.constant 0.000000e+00 : f32
    %17 = vector.broadcast %cst_11 : f32 to vector<64x512xf32>
    %18 = arith.maximumf %16, %17 : vector<64x512xf32>
    %c1_12 = arith.constant 1 : index
    %c0_13 = arith.constant 0 : index
    %c0_14 = arith.constant 0 : index
    %19 = vector.load %arg3[%c1_12, %c0_13, %c0_14] : memref<3x64x64xbf16, #tpu.memory_space<vmem>>, vector<1x64x64xbf16>
    %20 = vector.shape_cast %19 : vector<1x64x64xbf16> to vector<64x64xbf16>
    %21 = arith.truncf %18 : vector<64x512xf32> to vector<64x512xbf16>
    %cst_15 = arith.constant dense<0.000000e+00> : vector<64x512xf32>
    %22 = tpu.matmul %20, %21, %cst_15 {dimension_numbers = #tpu.dot_dimension_numbers<[1], [0], [0], [1], [0, 0, 1, 1], [], []>} : vector<64x64xbf16>, vector<64x512xbf16>, vector<64x512xf32> -> vector<64x512xf32>
    %c0_16 = arith.constant 0 : index
    %c2 = arith.constant 2 : index
    %23 = vector.load %arg5[%c0_16, %c2] : memref<64x5xf32, #tpu.memory_space<vmem>>, vector<64x1xf32>
    %24 = vector.broadcast %23 : vector<64x1xf32> to vector<64x512xf32>
    %25 = arith.addf %22, %24 : vector<64x512xf32>
    %cst_17 = arith.constant 0.000000e+00 : f32
    %26 = vector.broadcast %cst_17 : f32 to vector<64x512xf32>
    %27 = arith.maximumf %25, %26 : vector<64x512xf32>
    %c2_18 = arith.constant 2 : index
    %c0_19 = arith.constant 0 : index
    %c0_20 = arith.constant 0 : index
    %28 = vector.load %arg3[%c2_18, %c0_19, %c0_20] : memref<3x64x64xbf16, #tpu.memory_space<vmem>>, vector<1x64x64xbf16>
    %29 = vector.shape_cast %28 : vector<1x64x64xbf16> to vector<64x64xbf16>
    %30 = arith.truncf %27 : vector<64x512xf32> to vector<64x512xbf16>
    %cst_21 = arith.constant dense<0.000000e+00> : vector<64x512xf32>
    %31 = tpu.matmul %29, %30, %cst_21 {dimension_numbers = #tpu.dot_dimension_numbers<[1], [0], [0], [1], [0, 0, 1, 1], [], []>} : vector<64x64xbf16>, vector<64x512xbf16>, vector<64x512xf32> -> vector<64x512xf32>
    %c0_22 = arith.constant 0 : index
    %c3 = arith.constant 3 : index
    %32 = vector.load %arg5[%c0_22, %c3] : memref<64x5xf32, #tpu.memory_space<vmem>>, vector<64x1xf32>
    %33 = vector.broadcast %32 : vector<64x1xf32> to vector<64x512xf32>
    %34 = arith.addf %31, %33 : vector<64x512xf32>
    %cst_23 = arith.constant 0.000000e+00 : f32
    %35 = vector.broadcast %cst_23 : f32 to vector<64x512xf32>
    %36 = arith.maximumf %34, %35 : vector<64x512xf32>
    %c0_24 = arith.constant 0 : index
    %c0_25 = arith.constant 0 : index
    %37 = vector.load %arg4[%c0_24, %c0_25] : memref<8x64xbf16, #tpu.memory_space<vmem>>, vector<8x64xbf16>
    %38 = arith.truncf %36 : vector<64x512xf32> to vector<64x512xbf16>
    %cst_26 = arith.constant dense<0.000000e+00> : vector<8x512xf32>
    %39 = tpu.matmul %37, %38, %cst_26 {dimension_numbers = #tpu.dot_dimension_numbers<[1], [0], [0], [1], [0, 0, 1, 1], [], []>} : vector<8x64xbf16>, vector<64x512xbf16>, vector<8x512xf32> -> vector<8x512xf32>
    %40 = vector.extract_strided_slice %39 {offsets = [0, 0], sizes = [1, 512], strides = [1, 1]} : vector<8x512xf32> to vector<1x512xf32>
    %c0_27 = arith.constant 0 : index
    %c4 = arith.constant 4 : index
    %41 = vector.load %arg5[%c0_27, %c4] : memref<64x5xf32, #tpu.memory_space<vmem>>, vector<1x1xf32>
    %42 = vector.broadcast %41 : vector<1x1xf32> to vector<1x512xf32>
    %43 = arith.addf %40, %42 : vector<1x512xf32>
    %c0_28 = arith.constant 0 : index
    %c0_29 = arith.constant 0 : index
    %44 = vector.load %arg6[%c0_28, %c0_29] : memref<1x512xf32, #tpu.memory_space<vmem>>, vector<1x512xf32>
    tpu.vector_store %arg6[%c0_28, %c0_29], %43 {strides = array<i32>} : memref<1x512xf32, #tpu.memory_space<vmem>>, vector<1x512xf32>,
    return
  }
  func.func @transform_0(%arg0: i32) -> (i32, i32) {
    %c0_i32 = arith.constant 0 : i32
    %c0_i32_0 = arith.constant 0 : i32
    return %arg0, %c0_i32 : i32, i32
  }
  func.func @transform_1(%arg0: i32) -> (i32, i32) {
    %c0_i32 = arith.constant 0 : i32
    %c0_i32_0 = arith.constant 0 : i32
    %c0_i32_1 = arith.constant 0 : i32
    return %c0_i32, %c0_i32_0 : i32, i32
  }
  func.func @transform_2(%arg0: i32) -> (i32, i32, i32) {
    %c0_i32 = arith.constant 0 : i32
    %c0_i32_0 = arith.constant 0 : i32
    %c0_i32_1 = arith.constant 0 : i32
    %c0_i32_2 = arith.constant 0 : i32
    return %c0_i32, %c0_i32_0, %c0_i32_1 : i32, i32, i32
  }
  func.func @transform_3(%arg0: i32) -> (i32, i32) {
    %c0_i32 = arith.constant 0 : i32
    %c0_i32_0 = arith.constant 0 : i32
    %c0_i32_1 = arith.constant 0 : i32
    return %c0_i32, %c0_i32_0 : i32, i32
  }
  func.func @transform_4(%arg0: i32) -> (i32, i32) {
    %c0_i32 = arith.constant 0 : i32
    %c0_i32_0 = arith.constant 0 : i32
    %c0_i32_1 = arith.constant 0 : i32
    return %c0_i32, %c0_i32_0 : i32, i32
  }
  func.func @transform_5(%arg0: i32) -> (i32, i32) {
    %c0_i32 = arith.constant 0 : i32
    %c0_i32_0 = arith.constant 0 : i32
    return %c0_i32, %arg0 : i32, i32
  }
}

</mosaic_0001>

<bundles_post_ra>
// kernel: mlp_forward.1
= control target key start
LH: loop header
LB: loop body
LE: loop exit
PB: predicated region body
PF: predicated region fallthrough
CT: control target
= control target key end

     0   :  { %10 = vsyncpa [#allocation3], 0  ;;  %s2717_s0 = inlined_call_operand.vmem [shape: f32[1000,32], index: 0, kind: input, shape index: {}]   ;;  %s2718_s1 = inlined_call_operand.vmem [shape: bf16[64,32], index: 1, kind: input, shape index: {}]   ;;  %s2719_s2 = inlined_call_operand.vmem [shape: bf16[3,64,64], index: 2, kind: input, shape index: {}]   ;;  %s2720_s3 = inlined_call_operand.vmem [shape: bf16[8,64], index: 3, kind: input, shape index: {}]   ;;  %s2721_s4 = inlined_call_operand.vmem [shape: f32[64,5], index: 4, kind: input, shape index: {}]   ;;  %s2722_s5 = inlined_call_operand.hbm [shape: f32[1,1000], index: 5, kind: output, shape index: {}]  }
   0x1   :  { %12 = vsyncpa [#allocation3 + $0x1], 0  ;;  %s2045_s18 = smov 0   ;;  %s2047_s19 = smov 0  }
   0x2   :  { %s2049_s20 = smov 0   ;;  %s2051_s21 = smov 0  }
   0x3 LB: > { %s1726_s22 = sadd.s32 4294967295, %s2006_s21   ;;  %s1727_s23 = sadd.s32 4294967294, %s2006_s21   ;;  %s2006_s21 = sphi %s2051_s21, %s2735_s21   ;;  %s2002_s20 = sphi %s2049_s20, %s2734_s20   ;;  %s1998_s19 = sphi %s2047_s19, %s2733_s19   ;;  %s1994_s18 = sphi %s2045_s18, %s2732_s18  }
   0x4   : > { %s2068_s24 = sadd.s32 1, %s2006_s21   ;;  %s135_s25 = sadd.s32 1, %s2002_s20 }
   0x5   : > { %s132_s26 = ssub.s32 %s2006_s21, %s2068_s24  ;;  %p145_p0 = scmp.ne.s32.totalorder %s2002_s20, %s1998_s19 }
   0x6   : > { %p133_p1 = scmp.eq.s32.totalorder %s132_s26, 0  ;;  %p146_p2 = scmp.eq.s32.totalorder %s1726_s22, 1 }
   0x7   : > { %p151_p3 = scmp.ne.s32.totalorder %s1998_s19, %s1994_s18  ;;  %p152_p4 = scmp.eq.s32.totalorder %s1727_s23, 1 }
   0x8   : > { %s2078_s27 = scalar_select %p133_p1, %s2002_s20, %s135_s25  }
   0x9   : > { %p2080_p5 = por %p146_p2, %p145_p0  ;;  %p2084_p6 = por %p152_p4, %p151_p3 }
   0xa   : > { %p1730_p7 = scmp.ge.s32.totalorder %s2006_s21, 1  ;;  %p199_p8 = scmp.lt.s32.totalorder %s2006_s21, 3 }
   0xc   : > { %p200_p9 = pnand %p1730_p7, %p199_p8 }
   0xe   : > { %203 = sbr.rel (%p200_p9) target bundleno = 1294 (0x50e), region = 40 }
  0x13   : > { %s2090_s30 = sshll.u32 %s1726_s22, 6  ;;  %v2096_v0 = vld [vmem:[%s2718_s1] sm:$0xff]   ;;  %vm419_vm0 = vcmask 261120   ;;  %v2723_v1 = vmov 0   ;;  %v2107_v2 = vld [vmem:[%s2721_s4 + $0x30] sm:$0xff]  ;;  %v2124_v4 = vld [vmem:[%s2721_s4 + $0x38] sm:$0xff] }
  0x14   : > { %p236_p10 = scmp.lt.s32.totalorder %s2090_s30, 124  ;;  %1822 = vmatprep.mubr.msk.bf16.mxu0 %vm419_vm0, %v2096_v0  ;;  %1846 = vmatprep.mubr.msk.bf16.mxu1 %vm419_vm0, %v2096_v0  ;;  %v2114_v3 = vld [vmem:[%s2721_s4 + $0x20] sm:$0xff]  ;;  %v2130_v5 = vld [vmem:[%s2721_s4 + $0x28] sm:$0xff]  ;;  %v2145_v18 = vld [vmem:[%s2721_s4 + $0x10] sm:$0xff]  ;;  %vm782_vm1 = vcmask 523264   ;;  %s228_s9 = sand.u32 1, %s1998_s19  }
  0x15   : > { %1915 = vset.pattern.permute.xlu0 %v2723_v1  ;;  %1916 = vset.pattern.permute.xlu1 %v2723_v1  ;;  %v2162_v31 = vld [vmem:[%s2721_s4 + $0x18] sm:$0xff]  ;;  %v2175_v38 = vld [vmem:[%s2721_s4] sm:$0xff]  ;;  %v2180_v39 = vld [vmem:[%s2721_s4 + $0x8] sm:$0xff]  ;;  %s1731_s10 = sshll.u32 %s228_s9, 2  ;;  %s1666_s15 = scalar_lea.hbm %s2722_s5, %s2090_s30 }
  0x16   : > { %s237_s8 = scalar_select %p236_p10, %s2090_s30, 124  ;;  %391 = vperm.xlu0 %1915, %v2107_v2   ;;  %381 = vperm.xlu1 %1916, %v2114_v3   ;;  %2729 = vst [vmem:[#allocation5_spill] sm:$0xff] %v2180_v39 }
  0x17   : > { %s2014_s22 = smov [#allocation2]  }
  0x18   : > { %s1733_s11 = sshll.u32 %s237_s8, 3  ;;  %s1950_s23 = sshll.u32 %s2014_s22, 4  ;;  %s1951_s23 = int_to_ptr.vmem [resolvable:$false] %s1950_s23 }
  0x19   : > { %s2119_s16 = scalar_lea.vmem %s2717_s0, %s1733_s11  ;;  %s230_s11 = scalar_lea.vmem [#allocation2], %s1731_s10 }
  0x1a   : > { %v277_v6 = vld [vmem:[%s2119_s16 + $0xf0] sm:$0xff]  ;;  %v278_v7 = vld [vmem:[%s2119_s16 + $0xf8] sm:$0xff]  ;;  %v275_v17 = vld [vmem:[%s2119_s16 + $0xe0] sm:$0xff]  ;;  %396 = vperm.xlu0 %1915, %v2124_v4   ;;  %386 = vperm.xlu1 %1916, %v2130_v5   ;;  %s1668_s12 = sshll.u32 %s230_s11, 4  ;;  %s1952_s25 = scalar_lea.vmem %s1951_s23, 128  ;;  %s1669_s12 = int_to_ptr.vmem [resolvable:$true] %s1668_s12 }
  0x1b   : > { %v309_v8 = vld [vmem:[%s2119_s16 + $0x1f0] sm:$0xff]  ;;  %v326_v9 = vpack.c.bf16 %v278_v7, %v277_v6  ;;  %v310_v10 = vld [vmem:[%s2119_s16 + $0x1f8] sm:$0xff]  ;;  %v276_v20 = vld [vmem:[%s2119_s16 + $0xe8] sm:$0xff]  ;;  %s1946_s17 = scalar_lea.vmem %s1669_s12, 64  ;;  %p1953_p0 = scmp.lt.s32.totalorder %s1669_s12, %s1951_s23 }
  0x1c   : > { %v261_v11 = vld [vmem:[%s2119_s16 + $0x70] sm:$0xff]  ;;  %v262_v12 = vld [vmem:[%s2119_s16 + $0x78] sm:$0xff]  ;;  %v342_v13 = vpack.c.bf16 %v310_v10, %v309_v8  ;;  %v307_v21 = vld [vmem:[%s2119_s16 + $0x1e0] sm:$0xff]  ;;  %v325_v24 = vpack.c.bf16 %v276_v20, %v275_v17  ;;  %p1947_p11 = scmp.ne.s32.totalorder %s1669_s12, %s1946_s17  ;;  %p1954_p1 = scmp.lt.s32.totalorder %s1952_s25, %s1946_s17 }
  0x1d   : > { %v318_v14 = vpack.c.bf16 %v262_v12, %v261_v11  ;;  %v293_v15 = vld [vmem:[%s2119_s16 + $0x170] sm:$0xff]  ;;  %v294_v16 = vld [vmem:[%s2119_s16 + $0x178] sm:$0xff]  ;;  %1854 = vmatprep.subr.msk.bf16.mxu0 %vm419_vm0, %v326_v9  ;;  %v308_v22 = vld [vmem:[%s2119_s16 + $0x1e8] sm:$0xff] }
  0x1e   : > { %v334_v19 = vpack.c.bf16 %v294_v16, %v293_v15  ;;  %1862 = vmatprep.subr.msk.bf16.mxu1 %vm419_vm0, %v342_v13  ;;  %v341_v25 = vpack.c.bf16 %v308_v22, %v307_v21  ;;  %v259_v26 = vld [vmem:[%s2119_s16 + $0x60] sm:$0xff]  ;;  %v260_v27 = vld [vmem:[%s2119_s16 + $0x68] sm:$0xff]  ;;  %v273_v34 = vld [vmem:[%s2119_s16 + $0xd0] sm:$0xff]  ;;  %371 = vperm.xlu0 %1915, %v2145_v18   ;;  %p1948_p12 = pnand %p1947_p11, %p2080_p5  ;;  %p1955_p2 = por %p1954_p1, %p1953_p0 }
  0x1f   : > { %v454_v23 = vsel %vm419_vm0, %v318_v14, 0  ;;  %v291_v28 = vld [vmem:[%s2119_s16 + $0x160] sm:$0xff]  ;;  %v292_v30 = vld [vmem:[%s2119_s16 + $0x168] sm:$0xff]  ;;  %v317_v32 = vpack.c.bf16 %v260_v27, %v259_v26  ;;  %v274_v35 = vld [vmem:[%s2119_s16 + $0xd8] sm:$0xff]  ;;  %376 = vperm.xlu1 %1916, %v2162_v31  }
  0x20   : > { %1807 = vmatpush3.bf16.xpose.msra.mxu0 %v454_v23  ;;  %v502_v29 = vsel %vm419_vm0, %v334_v19, 0  ;;  %v333_v33 = vpack.c.bf16 %v292_v30, %v291_v28  ;;  %v305_v36 = vld [vmem:[%s2119_s16 + $0x1d0] sm:$0xff]  ;;  %v306_v37 = vld [vmem:[%s2119_s16 + $0x1d8] sm:$0xff]  ;;  %v324_v41 = vpack.c.bf16 %v274_v35, %v273_v34  ;;  %v271_v50 = vld [vmem:[%s2119_s16 + $0xc0] sm:$0xff]  ;;  %p1949_p13 = pneg %p1948_p12 }
  0x21   : > { %1831 = vmatpush3.bf16.xpose.msra.mxu1 %v502_v29  ;;  %1855 = vmatprep.subr.msk.bf16.mxu0 %vm419_vm0, %v325_v24  ;;  %v451_v40 = vsel %vm419_vm0, %v317_v32, 0  ;;  %v340_v43 = vpack.c.bf16 %v306_v37, %v305_v36  ;;  %v257_v44 = vld [vmem:[%s2119_s16 + $0x50] sm:$0xff]  ;;  %v258_v45 = vld [vmem:[%s2119_s16 + $0x58] sm:$0xff]  ;;  %v272_v51 = vld [vmem:[%s2119_s16 + $0xc8] sm:$0xff] }
  0x22   : > { %1863 = vmatprep.subr.msk.bf16.mxu1 %vm419_vm0, %v341_v25  ;;  %v499_v42 = vsel %vm419_vm0, %v333_v33, 0  ;;  %361 = vperm.xlu0 %1915, %v2175_v38   ;;  %v289_v46 = vld [vmem:[%s2119_s16 + $0x150] sm:$0xff]  ;;  %v290_v47 = vld [vmem:[%s2119_s16 + $0x158] sm:$0xff]  ;;  %v316_v48 = vpack.c.bf16 %v258_v45, %v257_v44  ;;  %v303_v52 = vld [vmem:[%s2119_s16 + $0x1c0] sm:$0xff]  ;;  %v323_v59 = vpack.c.bf16 %v272_v51, %v271_v50  ;;  %p1956_p3 = pnand %p1955_p2, %p1949_p13 }
  0x23   : > { %366 = vperm.xlu1 %1916, %v2180_v39   ;;  %v332_v49 = vpack.c.bf16 %v290_v47, %v289_v46  ;;  %v304_v53 = vld [vmem:[%s2119_s16 + $0x1c8] sm:$0xff]  ;;  %v255_v54 = vld [vmem:[%s2119_s16 + $0x40] sm:$0xff]  ;;  %v269_v6 = vld [vmem:[%s2119_s16 + $0xb0] sm:$0xff] }
  0x24   : > { %v256_v55 = vld [vmem:[%s2119_s16 + $0x48] sm:$0xff]  ;;  %v287_v56 = vld [vmem:[%s2119_s16 + $0x140] sm:$0xff]  ;;  %v448_v58 = vsel %vm419_vm0, %v316_v48, 0  ;;  %v339_v61 = vpack.c.bf16 %v304_v53, %v303_v52  ;;  %v270_v7 = vld [vmem:[%s2119_s16 + $0xb8] sm:$0xff] }
  0x25   : > { %v288_v57 = vld [vmem:[%s2119_s16 + $0x148] sm:$0xff]  ;;  %v496_v60 = vsel %vm419_vm0, %v332_v49, 0  ;;  %v315_v62 = vpack.c.bf16 %v256_v55, %v255_v54  ;;  %v301_v8 = vld [vmem:[%s2119_s16 + $0x1b0] sm:$0xff]  ;;  %v302_v9 = vld [vmem:[%s2119_s16 + $0x1b8] sm:$0xff]  ;;  %v322_v14 = vpack.c.bf16 %v270_v7, %v269_v6 }
  0x26   : > { %v331_v63 = vpack.c.bf16 %v288_v57, %v287_v56  ;;  %v253_v12 = vld [vmem:[%s2119_s16 + $0x30] sm:$0xff]  ;;  %v254_v13 = vld [vmem:[%s2119_s16 + $0x38] sm:$0xff]  ;;  %v338_v17 = vpack.c.bf16 %v302_v9, %v301_v8  ;;  %v267_v21 = vld [vmem:[%s2119_s16 + $0xa0] sm:$0xff] }
  0x27   : > { %v445_v10 = vsel %vm419_vm0, %v315_v62, 0  ;;  %v285_v15 = vld [vmem:[%s2119_s16 + $0x130] sm:$0xff]  ;;  %v286_v16 = vld [vmem:[%s2119_s16 + $0x138] sm:$0xff]  ;;  %v314_v19 = vpack.c.bf16 %v254_v13, %v253_v12  ;;  %v268_v22 = vld [vmem:[%s2119_s16 + $0xa8] sm:$0xff]  ;;  %v2009_v12 = vmov 1  }
  0x28   : > { %1809 = vmatpush3.bf16.xpose.msra.mxu0 %v451_v40  ;;  %v493_v11 = vsel %vm419_vm0, %v331_v63, 0  ;;  %v330_v20 = vpack.c.bf16 %v286_v16, %v285_v15  ;;  %v299_v23 = vld [vmem:[%s2119_s16 + $0x1a0] sm:$0xff]  ;;  %v300_v24 = vld [vmem:[%s2119_s16 + $0x1a8] sm:$0xff]  ;;  %v321_v26 = vpack.c.bf16 %v268_v22, %v267_v21  ;;  %v265_v36 = vld [vmem:[%s2119_s16 + $0x90] sm:$0xff]  ;;  %1918 = vset.pattern.permute.xlu1 %v2009_v12 }
  0x29   : > { %1833 = vmatpush3.bf16.xpose.msra.mxu1 %v499_v42  ;;  %1856 = vmatprep.subr.msk.bf16.mxu0 %vm419_vm0, %v324_v41  ;;  %v442_v25 = vsel %vm419_vm0, %v314_v19, 0  ;;  %v337_v28 = vpack.c.bf16 %v300_v24, %v299_v23  ;;  %v251_v29 = vld [vmem:[%s2119_s16 + $0x20] sm:$0xff]  ;;  %v252_v30 = vld [vmem:[%s2119_s16 + $0x28] sm:$0xff]  ;;  %v266_v37 = vld [vmem:[%s2119_s16 + $0x98] sm:$0xff] }
  0x2a   : > { %1864 = vmatprep.subr.msk.bf16.mxu1 %vm419_vm0, %v340_v43  ;;  %v490_v27 = vsel %vm419_vm0, %v330_v20, 0  ;;  %v283_v32 = vld [vmem:[%s2119_s16 + $0x120] sm:$0xff]  ;;  %v284_v33 = vld [vmem:[%s2119_s16 + $0x128] sm:$0xff]  ;;  %v313_v34 = vpack.c.bf16 %v252_v30, %v251_v29  ;;  %v297_v40 = vld [vmem:[%s2119_s16 + $0x190] sm:$0xff]  ;;  %v320_v43 = vpack.c.bf16 %v266_v37, %v265_v36  ;;  %1917 = vset.pattern.permute.xlu0 %v2009_v12 }
  0x2b   : > { %v329_v35 = vpack.c.bf16 %v284_v33, %v283_v32  ;;  %v298_v41 = vld [vmem:[%s2119_s16 + $0x198] sm:$0xff]  ;;  %v249_v46 = vld [vmem:[%s2119_s16 + $0x10] sm:$0xff]  ;;  %v263_v52 = vld [vmem:[%s2119_s16 + $0x80] sm:$0xff]  ;;  %759 = vperm.xlu1 %1918, %v2124_v4   ;;  %755 = vperm.xlu0 %1917, %v2107_v2  }
  0x2c   : > { %v439_v42 = vsel %vm419_vm0, %v313_v34, 0  ;;  %v336_v45 = vpack.c.bf16 %v298_v41, %v297_v40  ;;  %v250_v47 = vld [vmem:[%s2119_s16 + $0x18] sm:$0xff]  ;;  %v281_v48 = vld [vmem:[%s2119_s16 + $0x110] sm:$0xff]  ;;  %v264_v53 = vld [vmem:[%s2119_s16 + $0x88] sm:$0xff] }
  0x2d   : > { %v487_v44 = vsel %vm419_vm0, %v329_v35, 0  ;;  %v282_v49 = vld [vmem:[%s2119_s16 + $0x118] sm:$0xff]  ;;  %v312_v50 = vpack.c.bf16 %v250_v47, %v249_v46  ;;  %v295_v54 = vld [vmem:[%s2119_s16 + $0x180] sm:$0xff]  ;;  %v296_v55 = vld [vmem:[%s2119_s16 + $0x188] sm:$0xff]  ;;  %v319_v57 = vpack.c.bf16 %v264_v53, %v263_v52 }
  0x2e   : > { %v328_v51 = vpack.c.bf16 %v282_v49, %v281_v48  ;;  %v279_v62 = vld [vmem:[%s2119_s16 + $0x100] sm:$0xff]  ;;  %v280_v63 = vld [vmem:[%s2119_s16 + $0x108] sm:$0xff] }
  0x2f   : > { %v436_v56 = vsel %vm419_vm0, %v312_v50, 0  ;;  %v327_v7 = vpack.c.bf16 %v280_v63, %v279_v62  ;;  %747 = vperm.xlu1 %1918, %v2114_v3   ;;  %751 = vperm.xlu0 %1917, %v2130_v5  }
  0x30   : > { %1811 = vmatpush3.bf16.xpose.msra.mxu0 %v448_v58  ;;  %v484_v58 = vsel %vm419_vm0, %v328_v51, 0 }
  0x31   : > { %1835 = vmatpush3.bf16.xpose.msra.mxu1 %v496_v60  ;;  %1857 = vmatprep.subr.msk.bf16.mxu0 %vm419_vm0, %v323_v59  ;;  %v335_v59 = vpack.c.bf16 %v296_v55, %v295_v54  ;;  %v247_v60 = vld [vmem:[%s2119_s16] sm:$0xff]  ;;  %v481_v9 = vsel %vm419_vm0, %v327_v7, 0 }
  0x32   : > { %1865 = vmatprep.subr.msk.bf16.mxu1 %vm419_vm0, %v339_v61  ;;  %v248_v61 = vld [vmem:[%s2119_s16 + $0x8] sm:$0xff]  ;;  %s1654_s16 = scalar_lea.sflag [#allocation3], %s228_s9 }
  0x33   : > { %v311_v6 = vpack.c.bf16 %v248_v61, %v247_v60  ;;  %739 = vperm.xlu1 %1918, %v2145_v18   ;;  %743 = vperm.xlu0 %1917, %v2162_v31  }
  0x35   : > { %v433_v8 = vsel %vm419_vm0, %v311_v6, 0 }
  0x37   : > { %731 = vperm.xlu1 %1918, %v2175_v38   ;;  %735 = vperm.xlu0 %1917, %v2180_v39  }
  0x38   : > { %1813 = vmatpush3.bf16.xpose.msra.mxu0 %v445_v10  ;;  %v1926_v10 = vld [vmem:[%s2718_s1 + $0x8] sm:$0xff]  }
  0x39   : > { %1837 = vmatpush3.bf16.xpose.msra.mxu1 %v493_v11  ;;  %1858 = vmatprep.subr.msk.bf16.mxu0 %vm419_vm0, %v322_v14  ;;  %v1927_v11 = vld [vmem:[%s2718_s1 + $0x10] sm:$0xff]  }
  0x3a   : > { %1866 = vmatprep.subr.msk.bf16.mxu1 %vm419_vm0, %v338_v17 }
  0x40   : > { %1815 = vmatpush3.bf16.xpose.msra.mxu0 %v442_v25 }
  0x41   : > { %1839 = vmatpush3.bf16.xpose.msra.mxu1 %v490_v27  ;;  %1859 = vmatprep.subr.msk.bf16.mxu0 %vm419_vm0, %v321_v26 }
  0x42   : > { %1867 = vmatprep.subr.msk.bf16.mxu1 %vm419_vm0, %v337_v28 }
  0x48   : > { %1817 = vmatpush3.bf16.xpose.msra.mxu0 %v439_v42 }
  0x49   : > { %1841 = vmatpush3.bf16.xpose.msra.mxu1 %v487_v44  ;;  %1860 = vmatprep.subr.msk.bf16.mxu0 %vm419_vm0, %v320_v43 }
  0x4a   : > { %1868 = vmatprep.subr.msk.bf16.mxu1 %vm419_vm0, %v336_v45 }
  0x50   : > { %1819 = vmatpush3.bf16.xpose.msra.mxu0 %v436_v56 }
  0x51   : > { %1843 = vmatpush3.bf16.xpose.msra.mxu1 %v484_v58  ;;  %1861 = vmatprep.subr.msk.bf16.mxu0 %vm419_vm0, %v319_v57 }
  0x52   : > { %1869 = vmatprep.subr.msk.bf16.mxu1 %vm419_vm0, %v335_v59 }
  0x58   : > { %1821 = vmatpush3.bf16.xpose.msra.mxu0 %v433_v8 }
  0x59   : > { %1845 = vmatpush3.bf16.xpose.msra.mxu1 %v481_v9 }
  0x5f   : > { %1823 = vmatmul.mubr.msk.bf16.vlgmr.msra.gmra.mxu0 %vm419_vm0, %v2096_v0 }
  0x60   : > { %1847 = vmatmul.mubr.msk.bf16.vlgmr.msra.gmra.mxu1 %vm419_vm0, %v2096_v0  ;;  %1824 = vmatprep.mubr.msk.bf16.mxu0 %vm419_vm0, %v1926_v10  ;;  %v1928_v0 = vld [vmem:[%s2718_s1 + $0x18] sm:$0xff]  }
  0x61   : > { %1848 = vmatprep.mubr.msk.bf16.mxu1 %vm419_vm0, %v1926_v10 }
  0x67   : > { %1825 = vmatmul.mubr.msk.bf16.gmra.mxu0 %vm419_vm0, %v1926_v10 }
  0x68   : > { %1849 = vmatmul.mubr.msk.bf16.gmra.mxu1 %vm419_vm0, %v1926_v10  ;;  %1826 = vmatprep.mubr.msk.bf16.mxu0 %vm419_vm0, %v1927_v11 }
  0x69   : > { %1850 = vmatprep.mubr.msk.bf16.mxu1 %vm419_vm0, %v1927_v11 }
  0x6f   : > { %1827 = vmatmul.mubr.msk.bf16.gmra.mxu0 %vm419_vm0, %v1927_v11 }
  0x70   : > { %1851 = vmatmul.mubr.msk.bf16.gmra.mxu1 %vm419_vm0, %v1927_v11  ;;  %1828 = vmatprep.mubr.msk.bf16.mxu0 %vm419_vm0, %v1928_v0 }
  0x71   : > { %1852 = vmatprep.mubr.msk.bf16.mxu1 %vm419_vm0, %v1928_v0 }
  0x77   : > { %1829 = vmatmul.mubr.msk.bf16.gmra.mxu0 %vm419_vm0, %v1928_v0 }
  0x78   : > { %1853 = vmatmul.mubr.msk.bf16.gmra.mxu1 %vm419_vm0, %v1928_v0  ;;  %827 = vmatprep.mubr.bf16.mxu0 %v2723_v1 }
  0x79   : > { %900 = vmatprep.mubr.bf16.mxu1 %v2723_v1 }
  0x91   : > { %v392_v21 = vpop.permute.xlu0 %391  ;;  %v2297_v23 = vpop.permute.xlu1 %381 }
  0x95   : > { %v397_v29 = vpop.permute.xlu0 %396  ;;  %v387_v32 = vpop.permute.xlu1 %386 }
  0x99   : > { %v2303_v40 = vpop.permute.xlu0 %371 }
  0x9a   : > { %v377_v42 = vpop.permute.xlu1 %376 }
  0x9d   : > { %v2305_v48 = vpop.permute.xlu0 %361 }
  0x9e   : > { %v2313_v52 = vpop.permute.xlu1 %366 }
 0x11f   : > { %v2289_v13 = vpop.f32.mrf.mxu0 }
 0x120   : > { %v2291_v14 = vpop.f32.mrf.mxu1 }
 0x121   : > { %v564_v15 = vpop.f32.mrf.mxu0 }
 0x122   : > { %v637_v16 = vpop.f32.mrf.mxu1  ;;  %v2308_v50 = vadd.f32 %v564_v15, %v2305_v48 }
 0x123   : > { %v2293_v17 = vpop.f32.mrf.mxu0  ;;  %v2311_v51 = vadd.f32 %v637_v16, %v2305_v48 }
 0x124   : > { %v2295_v19 = vpop.f32.mrf.mxu1 }
 0x125   : > { %v568_v20 = vpop.f32.mrf.mxu0 }
 0x126   : > { %v641_v22 = vpop.f32.mrf.mxu1  ;;  %v2316_v54 = vadd.f32 %v568_v20, %v2313_v52 }
 0x127   : > { %v2299_v24 = vpop.f32.mrf.mxu0  ;;  %v2319_v55 = vadd.f32 %v641_v22, %v2313_v52 }
 0x128   : > { %v2301_v25 = vpop.f32.mrf.mxu1 }
 0x129   : > { %v574_v26 = vpop.f32.mrf.mxu0 }
 0x12a   : > { %v647_v27 = vpop.f32.mrf.mxu1  ;;  %v2322_v56 = vadd.f32 %v574_v26, %v2303_v40 }
 0x12b   : > { %v576_v28 = vpop.f32.mrf.mxu0  ;;  %v2325_v57 = vadd.f32 %v647_v27, %v2303_v40 }
 0x12c   : > { %v649_v30 = vpop.f32.mrf.mxu1  ;;  %v2327_v59 = vadd.f32 %v576_v28, %v377_v42 }
 0x12d   : > { %v578_v33 = vpop.f32.mrf.mxu0  ;;  %v2329_v60 = vadd.f32 %v649_v30, %v377_v42 }
 0x12e   : > { %v651_v34 = vpop.f32.mrf.mxu1  ;;  %v2331_v61 = vadd.f32 %v578_v33, %v377_v42 }
 0x12f   : > { %v582_v35 = vpop.f32.mrf.mxu0  ;;  %v2333_v62 = vadd.f32 %v651_v34, %v377_v42 }
 0x130   : > { %v655_v36 = vpop.f32.mrf.mxu1  ;;  %v583_v6 = vadd.f32 %v582_v35, %v2297_v23 }
 0x131   : > { %v584_v37 = vpop.f32.mrf.mxu0  ;;  %v656_v1 = vadd.f32 %v655_v36, %v2297_v23  ;;  %v567_v36 = vadd.f32 %v2293_v17, %v2313_v52  ;;  %v688_v17 = vmax.f32 %v2329_v60, 0.0 }
 0x132   : > { %v657_v41 = vpop.f32.mrf.mxu1  ;;  %v585_v20 = vadd.f32 %v584_v37, %v2297_v23 }
 0x133   : > { %v586_v43 = vpop.f32.mrf.mxu0  ;;  %v658_v22 = vadd.f32 %v657_v41, %v2297_v23 }
 0x134   : > { %v659_v44 = vpop.f32.mrf.mxu1  ;;  %v587_v30 = vadd.f32 %v586_v43, %v387_v32  ;;  %v691_v37 = vmax.f32 %v585_v20, 0.0 }
 0x135   : > { %v588_v45 = vpop.f32.mrf.mxu0  ;;  %v660_v33 = vadd.f32 %v659_v44, %v387_v32 }
 0x136   : > { %v661_v46 = vpop.f32.mrf.mxu1  ;;  %v589_v7 = vadd.f32 %v588_v45, %v387_v32 }
 0x137   : > { %v592_v47 = vpop.f32.mrf.mxu0  ;;  %v662_v11 = vadd.f32 %v661_v46, %v387_v32  ;;  %v687_v32 = vmax.f32 %v2331_v61, 0.0  ;;  %v683_v61 = vmax.f32 %v2322_v56, 0.0 }
 0x138   : > { %v665_v49 = vpop.f32.mrf.mxu1  ;;  %v593_v0 = vadd.f32 %v592_v47, %v392_v21  ;;  %v695_v42 = vmax.f32 %v589_v7, 0.0 }
 0x139   : > { %v594_v53 = vpop.f32.mrf.mxu0  ;;  %v666_v26 = vadd.f32 %v665_v49, %v392_v21  ;;  %v697_v46 = vmax.f32 %v662_v11, 0.0  ;;  %v694_v49 = vmax.f32 %v587_v30, 0.0  ;;  %v690_v11 = vmax.f32 %v583_v6, 0.0 }
 0x13a   : > { %v667_v58 = vpop.f32.mrf.mxu1  ;;  %v595_v8 = vadd.f32 %v594_v53, %v392_v21  ;;  %v698_v47 = vmax.f32 %v593_v0, 0.0  ;;  %v723_v44 = vpack.c.bf16 %v695_v42, %v691_v37  ;;  %v646_v0 = vadd.f32 %v2301_v25, %v2303_v40 }
 0x13b   : > { %v596_v63 = vpop.f32.mrf.mxu0  ;;  %v668_v12 = vadd.f32 %v667_v58, %v392_v21  ;;  %v700_v39 = vmax.f32 %v666_v26, 0.0  ;;  %v693_v21 = vmax.f32 %v658_v22, 0.0  ;;  %v722_v6 = vpack.c.bf16 %v694_v49, %v690_v11 }
 0x13c   : > { %v597_v9 = vadd.f32 %v596_v63, %v397_v29  ;;  %v669_v10 = vpop.f32.mrf.mxu1  ;;  %v699_v45 = vmax.f32 %v595_v8, 0.0  ;;  %v573_v8 = vadd.f32 %v2299_v24, %v2303_v40  ;;  %v685_v24 = vmax.f32 %v2325_v57, 0.0 }
 0x13d   : > { %v670_v15 = vadd.f32 %v669_v10, %v397_v29  ;;  %v598_v16 = vpop.f32.mrf.mxu0  ;;  %v701_v58 = vmax.f32 %v668_v12, 0.0  ;;  %v725_v23 = vpack.c.bf16 %v697_v46, %v693_v21  ;;  %v692_v12 = vmax.f32 %v656_v1, 0.0 }
 0x13e   : > { %v599_v27 = vadd.f32 %v598_v16, %v397_v29  ;;  %v671_v28 = vpop.f32.mrf.mxu1  ;;  %v702_v34 = vmax.f32 %v597_v9, 0.0  ;;  %v689_v9 = vmax.f32 %v2333_v62, 0.0  ;;  %v686_v62 = vmax.f32 %v2327_v59, 0.0 }
 0x13f   : > { %v672_v35 = vadd.f32 %v671_v28, %v397_v29  ;;  %v704_v53 = vmax.f32 %v670_v15, 0.0  ;;  %v696_v29 = vmax.f32 %v660_v33, 0.0  ;;  %v679_v15 = vmax.f32 %v2316_v54, 0.0  ;;  %v1930_v33 = vld [vmem:[%s2719_s2 + $0x8] sm:$0xff]  }
 0x140   : > { %v703_v63 = vmax.f32 %v599_v27, 0.0  ;;  %v726_v16 = vpack.c.bf16 %v702_v34, %v698_v47  ;;  %v719_v20 = vpack.c.bf16 %v687_v32, %v683_v61  ;;  %v563_v1 = vadd.f32 %v2289_v13, %v2305_v48  ;;  %v1931_v34 = vld [vmem:[%s2719_s2 + $0x10] sm:$0xff]  }
 0x141   : > { %v705_v10 = vmax.f32 %v672_v35, 0.0  ;;  %v728_v7 = vpack.c.bf16 %v704_v53, %v700_v39  ;;  %v640_v39 = vadd.f32 %v2295_v19, %v2313_v52  ;;  %v724_v25 = vpack.c.bf16 %v696_v29, %v692_v12  ;;  %v1932_v35 = vld [vmem:[%s2719_s2 + $0x18] sm:$0xff]  }
 0x142   : > { %v727_v41 = vpack.c.bf16 %v703_v63, %v699_v45  ;;  %v681_v40 = vmax.f32 %v2319_v55, 0.0  ;;  %v682_v56 = vmax.f32 %v573_v8, 0.0  ;;  %v721_v22 = vpack.c.bf16 %v689_v9, %v685_v24  ;;  %v2731_v45 = vld [vmem:[#allocation5_spill] sm:$0xff] }
 0x143   : > { %v729_v43 = vpack.c.bf16 %v705_v10, %v701_v58  ;;  %v636_v19 = vadd.f32 %v2291_v14, %v2305_v48  ;;  %v675_v52 = vmax.f32 %v2308_v50, 0.0  ;;  %v684_v57 = vmax.f32 %v646_v0, 0.0  ;;  %v1929_v50 = vld [vmem:[%s2719_s2] sm:$0xff]  }
 0x144   : > { %803 = vmatprep.subr.bf16.mxu0 %v727_v41  ;;  %v677_v54 = vmax.f32 %v2311_v51, 0.0  ;;  %v678_v59 = vmax.f32 %v567_v36, 0.0  ;;  %v718_v60 = vpack.c.bf16 %v686_v62, %v682_v56  ;;  %v680_v26 = vmax.f32 %v640_v39, 0.0 }
 0x145   : > { %876 = vmatprep.subr.bf16.mxu1 %v729_v43  ;;  %804 = vmatpush1.bf16.msra.mxu0 %v726_v16  ;;  %v715_v13 = vpack.c.bf16 %v679_v15, %v675_v52  ;;  %v720_v27 = vpack.c.bf16 %v688_v17, %v684_v57  ;;  %v674_v55 = vmax.f32 %v563_v1, 0.0  ;;  %v676_v30 = vmax.f32 %v636_v19, 0.0 }
 0x146   : > { %877 = vmatpush1.bf16.msra.mxu1 %v728_v7  ;;  %805 = vmatprep.subr.bf16.mxu0 %v723_v44  ;;  %v717_v28 = vpack.c.bf16 %v681_v40, %v677_v54  ;;  %v2730_v51 = vmov 0   ;;  %v2010_v42 = vmov 2  }
 0x147   : > { %878 = vmatprep.subr.bf16.mxu1 %v725_v23  ;;  %v714_v14 = vpack.c.bf16 %v678_v59, %v674_v55  ;;  %v716_v48 = vpack.c.bf16 %v680_v26, %v676_v30  ;;  %1919 = vset.pattern.permute.xlu1 %v2010_v42 }
 0x148   : > { %1920 = vset.pattern.permute.xlu0 %v2010_v42  ;;  %1023 = vperm.xlu1 %1919, %v2107_v2  }
 0x149   : > { %806 = vmatpush1.bf16.msra.mxu0 %v722_v6  ;;  %1027 = vperm.xlu0 %1920, %v2124_v4  }
 0x14a   : > { %879 = vmatpush1.bf16.msra.mxu1 %v724_v25  ;;  %807 = vmatprep.subr.bf16.mxu0 %v719_v20 }
 0x14b   : > { %880 = vmatprep.subr.bf16.mxu1 %v721_v22 }
 0x14c   : > { %1015 = vperm.xlu1 %1919, %v2114_v3  }
 0x14d   : > { %808 = vmatpush1.bf16.msra.mxu0 %v718_v60  ;;  %1007 = vperm.xlu0 %1920, %v2145_v18   ;;  %v760_v18 = vpop.permute.xlu1 %759 }
 0x14e   : > { %881 = vmatpush1.bf16.msra.mxu1 %v720_v27  ;;  %809 = vmatprep.subr.bf16.mxu0 %v715_v13 }
 0x14f   : > { %882 = vmatprep.subr.bf16.mxu1 %v717_v28 }
 0x150   : > { %1019 = vperm.xlu1 %1919, %v2130_v5   ;;  %v756_v5 = vpop.permute.xlu0 %755 }
 0x151   : > { %810 = vmatpush1.bf16.msra.mxu0 %v714_v14  ;;  %999 = vperm.xlu0 %1920, %v2175_v38   ;;  %v748_v16 = vpop.permute.xlu1 %747 }
 0x152   : > { %883 = vmatpush1.bf16.msra.mxu1 %v716_v48 }
 0x154   : > { %1750 = vmatmul.mubr.msk.bf16.vlgmr.msra.gmra.mxu0 %vm782_vm1, %v1929_v50  ;;  %1011 = vperm.xlu1 %1919, %v2162_v31   ;;  %v752_v32 = vpop.permute.xlu0 %751 }
 0x155   : > { %1754 = vmatmul.mubr.msk.bf16.vlgmr.msra.gmra.mxu1 %vm782_vm1, %v1929_v50  ;;  %837 = vmatprep.mubr.bf16.mxu0 %v2730_v51  ;;  %v2409_v11 = vpop.permute.xlu1 %739 }
 0x156   : > { %910 = vmatprep.mubr.bf16.mxu1 %v2730_v51 }
 0x158   : > { %1003 = vperm.xlu1 %1919, %v2731_v45   ;;  %v744_v36 = vpop.permute.xlu0 %743 }
 0x159   : > { %v2411_v62 = vpop.permute.xlu1 %731 }
 0x15c   : > { %1751 = vmatmul.mubr.msk.bf16.gmra.mxu0 %vm782_vm1, %v1930_v33  ;;  %v2419_v20 = vpop.permute.xlu0 %735 }
 0x15d   : > { %1755 = vmatmul.mubr.msk.bf16.gmra.mxu1 %vm782_vm1, %v1930_v33  ;;  %847 = vmatprep.mubr.bf16.mxu0 %v2730_v51 }
 0x15e   : > { %920 = vmatprep.mubr.bf16.mxu1 %v2730_v51 }
 0x164   : > { %1752 = vmatmul.mubr.msk.bf16.gmra.mxu0 %vm782_vm1, %v1931_v34 }
 0x165   : > { %1756 = vmatmul.mubr.msk.bf16.gmra.mxu1 %vm782_vm1, %v1931_v34  ;;  %857 = vmatprep.mubr.bf16.mxu0 %v2730_v51 }
 0x166   : > { %930 = vmatprep.mubr.bf16.mxu1 %v2730_v51 }
 0x16c   : > { %1753 = vmatmul.mubr.msk.bf16.gmra.mxu0 %vm782_vm1, %v1932_v35 }
 0x16d   : > { %1757 = vmatmul.mubr.msk.bf16.gmra.mxu1 %vm782_vm1, %v1932_v35  ;;  %1094 = vmatprep.mubr.bf16.mxu0 %v2730_v51 }
 0x16e   : > { %1167 = vmatprep.mubr.bf16.mxu1 %v2730_v51 }
 0x214   : > { %v2397_v53 = vpop.f32.mrf.mxu0 }
 0x215   : > { %v2399_v63 = vpop.f32.mrf.mxu1 }
 0x216   : > { %v831_v46 = vpop.f32.mrf.mxu0 }
 0x217   : > { %v904_v2 = vpop.f32.mrf.mxu1  ;;  %v2414_v15 = vadd.f32 %v831_v46, %v2411_v62 }
 0x218   : > { %v2401_v47 = vpop.f32.mrf.mxu0  ;;  %v2417_v17 = vadd.f32 %v904_v2, %v2411_v62 }
 0x219   : > { %v2403_v4 = vpop.f32.mrf.mxu1 }
 0x21a   : > { %v835_v3 = vpop.f32.mrf.mxu0 }
 0x21b   : > { %v908_v58 = vpop.f32.mrf.mxu1  ;;  %v2422_v1 = vadd.f32 %v835_v3, %v2419_v20 }
 0x21c   : > { %v2405_v10 = vpop.f32.mrf.mxu0  ;;  %v2425_v40 = vadd.f32 %v908_v58, %v2419_v20 }
 0x21d   : > { %v2407_v37 = vpop.f32.mrf.mxu1 }
 0x21e   : > { %v841_v41 = vpop.f32.mrf.mxu0 }
 0x21f   : > { %v914_v21 = vpop.f32.mrf.mxu1  ;;  %v2428_v56 = vadd.f32 %v841_v41, %v2409_v11 }
 0x220   : > { %v843_v49 = vpop.f32.mrf.mxu0  ;;  %v2431_v22 = vadd.f32 %v914_v21, %v2409_v11 }
 0x221   : > { %v916_v43 = vpop.f32.mrf.mxu1  ;;  %v2433_v52 = vadd.f32 %v843_v49, %v744_v36 }
 0x222   : > { %v845_v29 = vpop.f32.mrf.mxu0  ;;  %v2435_v57 = vadd.f32 %v916_v43, %v744_v36 }
 0x223   : > { %v918_v44 = vpop.f32.mrf.mxu1  ;;  %v2437_v54 = vadd.f32 %v845_v29, %v744_v36 }
 0x224   : > { %v849_v7 = vpop.f32.mrf.mxu0  ;;  %v2439_v59 = vadd.f32 %v918_v44, %v744_v36 }
 0x225   : > { %v922_v8 = vpop.f32.mrf.mxu1  ;;  %v850_v26 = vadd.f32 %v849_v7, %v748_v16 }
 0x226   : > { %v851_v9 = vpop.f32.mrf.mxu0 }
 0x227   : > { %v924_v23 = vpop.f32.mrf.mxu1  ;;  %v852_v34 = vadd.f32 %v851_v9, %v748_v16 }
 0x228   : > { %v853_v0 = vpop.f32.mrf.mxu0  ;;  %v925_v35 = vadd.f32 %v924_v23, %v748_v16 }
 0x229   : > { %v926_v61 = vpop.f32.mrf.mxu1  ;;  %v854_v3 = vadd.f32 %v853_v0, %v752_v32 }
 0x22a   : > { %v855_v12 = vpop.f32.mrf.mxu0  ;;  %v927_v58 = vadd.f32 %v926_v61, %v752_v32  ;;  %v960_v23 = vmax.f32 %v925_v35, 0.0 }
 0x22b   : > { %v928_v39 = vpop.f32.mrf.mxu1  ;;  %v856_v13 = vadd.f32 %v855_v12, %v752_v32 }
 0x22c   : > { %v859_v24 = vpop.f32.mrf.mxu0  ;;  %v929_v30 = vadd.f32 %v928_v39, %v752_v32  ;;  %v954_v32 = vmax.f32 %v2437_v54, 0.0  ;;  %v963_v0 = vmax.f32 %v927_v58, 0.0  ;;  %v950_v54 = vmax.f32 %v2428_v56, 0.0  ;;  %v1936_v58 = vld [vmem:[%s2719_s2 + $0x38] sm:$0xff]  }
 0x22d   : > { %v932_v6 = vpop.f32.mrf.mxu1  ;;  %v860_v14 = vadd.f32 %v859_v24, %v756_v5  ;;  %v962_v49 = vmax.f32 %v856_v13, 0.0  ;;  %v923_v24 = vadd.f32 %v922_v8, %v748_v16  ;;  %v840_v13 = vadd.f32 %v2405_v10, %v2409_v11 }
 0x22e   : > { %v861_v25 = vpop.f32.mrf.mxu0  ;;  %v933_v42 = vadd.f32 %v932_v6, %v756_v5  ;;  %v964_v7 = vmax.f32 %v929_v30, 0.0  ;;  %v834_v8 = vadd.f32 %v2401_v47, %v2419_v20  ;;  %v907_v10 = vadd.f32 %v2403_v4, %v2419_v20 }
 0x22f   : > { %v934_v19 = vpop.f32.mrf.mxu1  ;;  %v862_v27 = vadd.f32 %v861_v25, %v756_v5  ;;  %v965_v36 = vmax.f32 %v860_v14, 0.0  ;;  %v958_v25 = vmax.f32 %v852_v34, 0.0  ;;  %v959_v30 = vmax.f32 %v923_v24, 0.0 }
 0x230   : > { %v863_v60 = vpop.f32.mrf.mxu0  ;;  %v935_v48 = vadd.f32 %v934_v19, %v756_v5  ;;  %v967_v19 = vmax.f32 %v933_v42, 0.0  ;;  %v961_v5 = vmax.f32 %v854_v3, 0.0  ;;  %v993_v16 = vpack.c.bf16 %v964_v7, %v960_v23  ;;  %v1935_v3 = vld [vmem:[%s2719_s2 + $0x30] sm:$0xff]  }
 0x231   : > { %v864_v55 = vadd.f32 %v863_v60, %v760_v18  ;;  %v936_v28 = vpop.f32.mrf.mxu1  ;;  %v966_v43 = vmax.f32 %v862_v27, 0.0  ;;  %v956_v27 = vmax.f32 %v2439_v59, 0.0  ;;  %v952_v59 = vmax.f32 %v2431_v22, 0.0 }
 0x232   : > { %v937_v50 = vadd.f32 %v936_v28, %v760_v18  ;;  %v865_v33 = vpop.f32.mrf.mxu0  ;;  %v968_v12 = vmax.f32 %v935_v48, 0.0  ;;  %v913_v28 = vadd.f32 %v2407_v37, %v2409_v11  ;;  %v946_v48 = vmax.f32 %v2422_v1, 0.0 }
 0x233   : > { %v866_v46 = vadd.f32 %v865_v33, %v760_v18  ;;  %v938_v2 = vpop.f32.mrf.mxu1  ;;  %v969_v41 = vmax.f32 %v864_v55, 0.0  ;;  %v957_v55 = vmax.f32 %v850_v26, 0.0  ;;  %v953_v26 = vmax.f32 %v2433_v52, 0.0 }
 0x234   : > { %v939_v21 = vadd.f32 %v938_v2, %v760_v18  ;;  %v971_v29 = vmax.f32 %v937_v50, 0.0  ;;  %v991_v18 = vpack.c.bf16 %v962_v49, %v958_v25  ;;  %v955_v47 = vmax.f32 %v2435_v57, 0.0  ;;  %v1942_v49 = vld [vmem:[%s2721_s4 + $0x30] sm:$0xff] }
 0x235   : > { %v970_v44 = vmax.f32 %v866_v46, 0.0  ;;  %v994_v6 = vpack.c.bf16 %v969_v41, %v965_v36  ;;  %v990_v14 = vpack.c.bf16 %v961_v5, %v957_v55  ;;  %v987_v50 = vpack.c.bf16 %v954_v32, %v950_v54  ;;  %v1028_v32 = vpop.permute.xlu0 %1027 }
 0x236   : > { %v972_v39 = vmax.f32 %v939_v21, 0.0  ;;  %v996_v61 = vpack.c.bf16 %v971_v29, %v967_v19  ;;  %v992_v37 = vpack.c.bf16 %v963_v0, %v959_v30  ;;  %v830_v11 = vadd.f32 %v2397_v53, %v2411_v62  ;;  %v1941_v21 = vld [vmem:[%s2721_s4 + $0x38] sm:$0xff]  ;;  %v1944_v29 = vld [vmem:[%s2721_s4 + $0x28] sm:$0xff] }
 0x237   : > { %v995_v9 = vpack.c.bf16 %v970_v44, %v966_v43  ;;  %v948_v56 = vmax.f32 %v2425_v40, 0.0  ;;  %v949_v33 = vmax.f32 %v840_v13, 0.0  ;;  %v989_v34 = vpack.c.bf16 %v956_v27, %v952_v59  ;;  %v1943_v43 = vld [vmem:[%s2721_s4 + $0x20] sm:$0xff]  ;;  %v1945_v44 = vld [vmem:[%s2721_s4 + $0x10] sm:$0xff] }
 0x238   : > { %v997_v60 = vpack.c.bf16 %v972_v39, %v968_v12  ;;  %v903_v4 = vadd.f32 %v2399_v63, %v2411_v62  ;;  %v942_v20 = vmax.f32 %v2414_v15, 0.0  ;;  %v951_v22 = vmax.f32 %v913_v28, 0.0  ;;  %v1933_v15 = vld [vmem:[%s2719_s2 + $0x20] sm:$0xff]   ;;  %v1024_v12 = vpop.permute.xlu1 %1023 }
 0x239   : > { %1070 = vmatprep.subr.bf16.mxu0 %v995_v9  ;;  %v944_v1 = vmax.f32 %v2417_v17, 0.0  ;;  %v945_v52 = vmax.f32 %v834_v8, 0.0  ;;  %v986_v57 = vpack.c.bf16 %v953_v26, %v949_v33  ;;  %v947_v35 = vmax.f32 %v907_v10, 0.0  ;;  %v1934_v17 = vld [vmem:[%s2719_s2 + $0x28] sm:$0xff]   ;;  %v2523_v8 = vpop.permute.xlu0 %1007 }
 0x23a   : > { %1143 = vmatprep.subr.bf16.mxu1 %v997_v60  ;;  %1071 = vmatpush1.bf16.msra.mxu0 %v994_v6  ;;  %v983_v53 = vpack.c.bf16 %v946_v48, %v942_v20  ;;  %v988_v42 = vpack.c.bf16 %v955_v47, %v951_v22  ;;  %v941_v40 = vmax.f32 %v830_v11, 0.0  ;;  %v943_v2 = vmax.f32 %v903_v4, 0.0 }
 0x23b   : > { %1144 = vmatpush1.bf16.msra.mxu1 %v996_v61  ;;  %1072 = vmatprep.subr.bf16.mxu0 %v991_v18  ;;  %v985_v46 = vpack.c.bf16 %v948_v56, %v944_v1  ;;  %v2011_v41 = vmov 3  }
 0x23c   : > { %1145 = vmatprep.subr.bf16.mxu1 %v993_v16  ;;  %v982_v63 = vpack.c.bf16 %v945_v52, %v941_v40  ;;  %v984_v62 = vpack.c.bf16 %v947_v35, %v943_v2  ;;  %1922 = vset.pattern.permute.xlu1 %v2011_v41  ;;  %v2517_v5 = vpop.permute.xlu1 %1015 }
 0x23d   : > { %1921 = vset.pattern.permute.xlu0 %v2011_v41  ;;  %1294 = vperm.xlu1 %1922, %v1941_v21   ;;  %v2525_v48 = vpop.permute.xlu0 %999 }
 0x23e   : > { %1073 = vmatpush1.bf16.msra.mxu0 %v990_v14  ;;  %1290 = vperm.xlu0 %1921, %v1942_v49  }
 0x23f   : > { %1146 = vmatpush1.bf16.msra.mxu1 %v992_v37  ;;  %1074 = vmatprep.subr.bf16.mxu0 %v987_v50 }
 0x240   : > { %1147 = vmatprep.subr.bf16.mxu1 %v989_v34  ;;  %v1020_v18 = vpop.permute.xlu1 %1019 }
 0x241   : > { %1282 = vperm.xlu1 %1922, %v1943_v43  }
 0x242   : > { %1075 = vmatpush1.bf16.msra.mxu0 %v986_v57  ;;  %1286 = vperm.xlu0 %1921, %v1944_v29  }
 0x243   : > { %1148 = vmatpush1.bf16.msra.mxu1 %v988_v42  ;;  %1076 = vmatprep.subr.bf16.mxu0 %v983_v53 }
 0x244   : > { %1149 = vmatprep.subr.bf16.mxu1 %v985_v46  ;;  %v1012_v54 = vpop.permute.xlu1 %1011 }
 0x245   : > { %1274 = vperm.xlu1 %1922, %v1945_v44  }
 0x246   : > { %1077 = vmatpush1.bf16.msra.mxu0 %v982_v63  ;;  %1278 = vperm.xlu0 %1921, %v2162_v31  }
 0x247   : > { %1150 = vmatpush1.bf16.msra.mxu1 %v984_v62 }
 0x248   : > { %v2533_v11 = vpop.permute.xlu1 %1003 }
 0x249   : > { %1770 = vmatmul.mubr.msk.bf16.vlgmr.msra.gmra.mxu0 %vm782_vm1, %v1933_v15  ;;  %1266 = vperm.xlu1 %1922, %v2175_v38  }
 0x24a   : > { %1774 = vmatmul.mubr.msk.bf16.vlgmr.msra.gmra.mxu1 %vm782_vm1, %v1933_v15  ;;  %1104 = vmatprep.mubr.bf16.mxu0 %v2730_v51 }
 0x24b   : > { %1177 = vmatprep.mubr.bf16.mxu1 %v2730_v51  ;;  %1270 = vperm.xlu0 %1921, %v2731_v45  }
 0x251   : > { %1771 = vmatmul.mubr.msk.bf16.gmra.mxu0 %vm782_vm1, %v1934_v17 }
 0x252   : > { %1775 = vmatmul.mubr.msk.bf16.gmra.mxu1 %vm782_vm1, %v1934_v17  ;;  %1114 = vmatprep.mubr.bf16.mxu0 %v2730_v51 }
 0x253   : > { %1187 = vmatprep.mubr.bf16.mxu1 %v2730_v51 }
 0x259   : > { %1772 = vmatmul.mubr.msk.bf16.gmra.mxu0 %vm782_vm1, %v1935_v3 }
 0x25a   : > { %1776 = vmatmul.mubr.msk.bf16.gmra.mxu1 %vm782_vm1, %v1935_v3  ;;  %1124 = vmatprep.mubr.bf16.mxu0 %v2730_v51 }
 0x25b   : > { %1197 = vmatprep.mubr.bf16.mxu1 %v2730_v51 }
 0x261   : > { %1773 = vmatmul.mubr.msk.bf16.gmra.mxu0 %vm782_vm1, %v1936_v58 }
 0x262   : > { %1777 = vmatmul.mubr.msk.bf16.gmra.mxu1 %vm782_vm1, %v1936_v58  ;;  %1361 = vmatprep.mubr.bf16.mxu0 %v2730_v51 }
 0x263   : > { %1434 = vmatprep.mubr.bf16.mxu1 %v2730_v51 }
 0x309   : > { %v2509_v7 = vpop.f32.mrf.mxu0 }
 0x30a   : > { %v2511_v36 = vpop.f32.mrf.mxu1 }
 0x30b   : > { %v1098_v39 = vpop.f32.mrf.mxu0 }
 0x30c   : > { %v1171_v24 = vpop.f32.mrf.mxu1  ;;  %v2528_v50 = vadd.f32 %v1098_v39, %v2525_v48 }
 0x30d   : > { %v2513_v25 = vpop.f32.mrf.mxu0  ;;  %v2531_v37 = vadd.f32 %v1171_v24, %v2525_v48 }
 0x30e   : > { %v2515_v19 = vpop.f32.mrf.mxu1 }
 0x30f   : > { %v1102_v9 = vpop.f32.mrf.mxu0 }
 0x310   : > { %v1175_v23 = vpop.f32.mrf.mxu1  ;;  %v2536_v33 = vadd.f32 %v1102_v9, %v2533_v11 }
 0x311   : > { %v2519_v31 = vpop.f32.mrf.mxu0  ;;  %v2539_v34 = vadd.f32 %v1175_v23, %v2533_v11 }
 0x312   : > { %v2521_v38 = vpop.f32.mrf.mxu1 }
 0x313   : > { %v1108_v45 = vpop.f32.mrf.mxu0 }
 0x314   : > { %v1181_v6 = vpop.f32.mrf.mxu1  ;;  %v2542_v4 = vadd.f32 %v1108_v45, %v2523_v8 }
 0x315   : > { %v1110_v60 = vpop.f32.mrf.mxu0  ;;  %v2545_v20 = vadd.f32 %v1181_v6, %v2523_v8 }
 0x316   : > { %v1183_v0 = vpop.f32.mrf.mxu1  ;;  %v2547_v1 = vadd.f32 %v1110_v60, %v1012_v54 }
 0x317   : > { %v1112_v61 = vpop.f32.mrf.mxu0  ;;  %v2549_v52 = vadd.f32 %v1183_v0, %v1012_v54 }
 0x318   : > { %v1185_v13 = vpop.f32.mrf.mxu1  ;;  %v2551_v57 = vadd.f32 %v1112_v61, %v1012_v54 }
 0x319   : > { %v1116_v27 = vpop.f32.mrf.mxu0  ;;  %v2553_v35 = vadd.f32 %v1185_v13, %v1012_v54 }
 0x31a   : > { %v1189_v55 = vpop.f32.mrf.mxu1  ;;  %v1117_v42 = vadd.f32 %v1116_v27, %v2517_v5 }
 0x31b   : > { %v1118_v16 = vpop.f32.mrf.mxu0  ;;  %v1190_v54 = vadd.f32 %v1189_v55, %v2517_v5  ;;  %v1101_v55 = vadd.f32 %v2513_v25, %v2533_v11  ;;  %v1222_v25 = vmax.f32 %v2549_v52, 0.0 }
 0x31c   : > { %v1191_v28 = vpop.f32.mrf.mxu1  ;;  %v1119_v41 = vadd.f32 %v1118_v16, %v2517_v5 }
 0x31d   : > { %v1120_v30 = vpop.f32.mrf.mxu0  ;;  %v1192_v21 = vadd.f32 %v1191_v28, %v2517_v5 }
 0x31e   : > { %v1193_v10 = vpop.f32.mrf.mxu1  ;;  %v1121_v44 = vadd.f32 %v1120_v30, %v1020_v18  ;;  %v1225_v16 = vmax.f32 %v1119_v41, 0.0 }
 0x31f   : > { %v1122_v59 = vpop.f32.mrf.mxu0  ;;  %v1194_v39 = vadd.f32 %v1193_v10, %v1020_v18 }
 0x320   : > { %v1195_v26 = vpop.f32.mrf.mxu1  ;;  %v1123_v40 = vadd.f32 %v1122_v59, %v1020_v18 }
 0x321   : > { %v1126_v14 = vpop.f32.mrf.mxu0  ;;  %v1196_v62 = vadd.f32 %v1195_v26, %v1020_v18  ;;  %v1228_v26 = vmax.f32 %v1121_v44, 0.0  ;;  %v1221_v18 = vmax.f32 %v2551_v57, 0.0  ;;  %v1217_v57 = vmax.f32 %v2542_v4, 0.0 }
 0x322   : > { %v1199_v47 = vpop.f32.mrf.mxu1  ;;  %v1127_v15 = vadd.f32 %v1126_v14, %v1024_v12  ;;  %v1229_v23 = vmax.f32 %v1123_v40, 0.0  ;;  %v1180_v40 = vadd.f32 %v2521_v38, %v2523_v8  ;;  %v1215_v4 = vmax.f32 %v2539_v34, 0.0 }
 0x323   : > { %v1128_v56 = vpop.f32.mrf.mxu0  ;;  %v1200_v49 = vadd.f32 %v1199_v47, %v1024_v12  ;;  %v1231_v0 = vmax.f32 %v1196_v62, 0.0  ;;  %v1254_v62 = vpack.c.bf16 %v1221_v18, %v1217_v57  ;;  %v2012_v44 = vmov 4  }
 0x324   : > { %v1201_v22 = vpop.f32.mrf.mxu1  ;;  %v1129_v46 = vadd.f32 %v1128_v56, %v1024_v12  ;;  %v1232_v61 = vmax.f32 %v1127_v15, 0.0  ;;  %v1258_v10 = vpack.c.bf16 %v1229_v23, %v1225_v16  ;;  %v1107_v56 = vadd.f32 %v2519_v31, %v2523_v8  ;;  %1923 = vset.pattern.permute.xlu1 %v2012_v44  ;;  %1924 = vset.pattern.permute.xlu0 %v2012_v44 }
 0x325   : > { %v1130_v53 = vpop.f32.mrf.mxu0  ;;  %v1202_v17 = vadd.f32 %v1201_v22, %v1024_v12  ;;  %v1234_v59 = vmax.f32 %v1200_v49, 0.0  ;;  %v1227_v12 = vmax.f32 %v1192_v21, 0.0  ;;  %v1223_v22 = vmax.f32 %v2553_v35, 0.0  ;;  %v1939_v49 = vld [vmem:[%s2719_s2 + $0x50] sm:$0xff]  }
 0x326   : > { %v1131_v2 = vadd.f32 %v1130_v53, %v1028_v32  ;;  %v1203_v63 = vpop.f32.mrf.mxu1  ;;  %v1233_v45 = vmax.f32 %v1129_v46, 0.0  ;;  %v1224_v53 = vmax.f32 %v1117_v42, 0.0  ;;  %v1226_v46 = vmax.f32 %v1190_v54, 0.0 }
 0x327   : > { %v1204_v3 = vadd.f32 %v1203_v63, %v1028_v32  ;;  %v1132_v58 = vpop.f32.mrf.mxu0  ;;  %v1235_v13 = vmax.f32 %v1202_v17, 0.0  ;;  %v1260_v5 = vpack.c.bf16 %v1231_v0, %v1227_v12  ;;  %v1174_v31 = vadd.f32 %v2515_v19, %v2533_v11 }
 0x328   : > { %v1133_v43 = vadd.f32 %v1132_v58, %v1028_v32  ;;  %v1205_v29 = vpop.f32.mrf.mxu1  ;;  %v1236_v24 = vmax.f32 %v1131_v2, 0.0  ;;  %v1219_v35 = vmax.f32 %v2545_v20, 0.0  ;;  %v1220_v42 = vmax.f32 %v2547_v1, 0.0 }
 0x329   : > { %v1206_v9 = vadd.f32 %v1205_v29, %v1028_v32  ;;  %v1238_v6 = vmax.f32 %v1204_v3, 0.0  ;;  %v1230_v32 = vmax.f32 %v1194_v39, 0.0  ;;  %v1257_v2 = vpack.c.bf16 %v1228_v26, %v1224_v53  ;;  %v1609_v29 = vld [vmem:[%s2721_s4] sm:$0x1] }
 0x32a   : > { %v1237_v60 = vmax.f32 %v1133_v43, 0.0  ;;  %v1261_v14 = vpack.c.bf16 %v1236_v24, %v1232_v61  ;;  %v1213_v63 = vmax.f32 %v2536_v33, 0.0  ;;  %v1097_v8 = vadd.f32 %v2509_v7, %v2525_v48  ;;  %v1940_v43 = vld [vmem:[%s2719_s2 + $0x58] sm:$0xff]   ;;  %1612 = vperm.xlu1 %1923, %v1609_v29   ;;  %v1291_v61 = vpop.permute.xlu0 %1290 }
 0x32b   : > { %v1239_v27 = vmax.f32 %v1206_v9, 0.0  ;;  %v1263_v47 = vpack.c.bf16 %v1238_v6, %v1234_v59  ;;  %v1259_v38 = vpack.c.bf16 %v1230_v32, %v1226_v46  ;;  %v1216_v15 = vmax.f32 %v1107_v56, 0.0 }
 0x32c   : > { %v1262_v28 = vpack.c.bf16 %v1237_v60, %v1233_v45  ;;  %v1256_v17 = vpack.c.bf16 %v1223_v22, %v1219_v35  ;;  %v1170_v19 = vadd.f32 %v2511_v36, %v2525_v48  ;;  %v1209_v11 = vmax.f32 %v2528_v50, 0.0  ;;  %v1937_v50 = vld [vmem:[%s2719_s2 + $0x40] sm:$0xff]  }
 0x32d   : > { %v1264_v30 = vpack.c.bf16 %v1239_v27, %v1235_v13  ;;  %v1218_v20 = vmax.f32 %v1180_v40, 0.0  ;;  %v1211_v33 = vmax.f32 %v2531_v37, 0.0  ;;  %v1212_v1 = vmax.f32 %v1101_v55, 0.0  ;;  %v1938_v37 = vld [vmem:[%s2719_s2 + $0x48] sm:$0xff]  }
 0x32e   : > { %1337 = vmatprep.subr.bf16.mxu0 %v1262_v28  ;;  %v1253_v52 = vpack.c.bf16 %v1220_v42, %v1216_v15  ;;  %v1214_v3 = vmax.f32 %v1174_v31, 0.0  ;;  %v1250_v7 = vpack.c.bf16 %v1213_v63, %v1209_v11  ;;  %v1208_v34 = vmax.f32 %v1097_v8, 0.0  ;;  %v1287_v26 = vpop.permute.xlu0 %1286 }
 0x32f   : > { %1410 = vmatprep.subr.bf16.mxu1 %v1264_v30  ;;  %1338 = vmatpush1.bf16.msra.mxu0 %v1261_v14  ;;  %v1255_v58 = vpack.c.bf16 %v1222_v25, %v1218_v20  ;;  %v1252_v41 = vpack.c.bf16 %v1215_v4, %v1211_v33  ;;  %v1210_v21 = vmax.f32 %v1170_v19, 0.0 }
 0x330   : > { %1411 = vmatpush1.bf16.msra.mxu1 %v1263_v47  ;;  %1339 = vmatprep.subr.bf16.mxu0 %v1258_v10  ;;  %v1249_v36 = vpack.c.bf16 %v1212_v1, %v1208_v34 }
 0x331   : > { %1412 = vmatprep.subr.bf16.mxu1 %v1260_v5  ;;  %v1251_v48 = vpack.c.bf16 %v1214_v3, %v1210_v21 }
 0x332   : > { %v1279_v22 = vpop.permute.xlu0 %1278 }
 0x333   : > { %1340 = vmatpush1.bf16.msra.mxu0 %v1257_v2 }
 0x334   : > { %1413 = vmatpush1.bf16.msra.mxu1 %v1259_v38  ;;  %1341 = vmatprep.subr.bf16.mxu0 %v1254_v62 }
 0x335   : > { %1414 = vmatprep.subr.bf16.mxu1 %v1256_v17 }
 0x336   : > { %v2634_v2 = vpop.permute.xlu0 %1270 }
 0x337   : > { %1342 = vmatpush1.bf16.msra.mxu0 %v1253_v52 }
 0x338   : > { %1415 = vmatpush1.bf16.msra.mxu1 %v1255_v58  ;;  %1343 = vmatprep.subr.bf16.mxu0 %v1250_v7 }
 0x339   : > { %1416 = vmatprep.subr.bf16.mxu1 %v1252_v41 }
 0x33b   : > { %1344 = vmatpush1.bf16.msra.mxu0 %v1249_v36 }
 0x33c   : > { %1417 = vmatpush1.bf16.msra.mxu1 %v1251_v48 }
 0x33e   : > { %1790 = vmatmul.mubr.msk.bf16.vlgmr.msra.gmra.mxu0 %vm782_vm1, %v1937_v50 }
 0x33f   : > { %1794 = vmatmul.mubr.msk.bf16.vlgmr.msra.gmra.mxu1 %vm782_vm1, %v1937_v50  ;;  %1371 = vmatprep.mubr.bf16.mxu0 %v2730_v51 }
 0x340   : > { %1444 = vmatprep.mubr.bf16.mxu1 %v2730_v51 }
 0x346   : > { %1791 = vmatmul.mubr.msk.bf16.gmra.mxu0 %vm782_vm1, %v1938_v37 }
 0x347   : > { %1795 = vmatmul.mubr.msk.bf16.gmra.mxu1 %vm782_vm1, %v1938_v37  ;;  %1381 = vmatprep.mubr.bf16.mxu0 %v2730_v51 }
 0x348   : > { %1454 = vmatprep.mubr.bf16.mxu1 %v2730_v51 }
 0x34e   : > { %1792 = vmatmul.mubr.msk.bf16.gmra.mxu0 %vm782_vm1, %v1939_v49 }
 0x34f   : > { %1796 = vmatmul.mubr.msk.bf16.gmra.mxu1 %vm782_vm1, %v1939_v49  ;;  %1391 = vmatprep.mubr.bf16.mxu0 %v2730_v51 }
 0x350   : > { %1464 = vmatprep.mubr.bf16.mxu1 %v2730_v51 }
 0x356   : > { %1793 = vmatmul.mubr.msk.bf16.gmra.mxu0 %vm782_vm1, %v1940_v43 }
 0x357   : > { %1797 = vmatmul.mubr.msk.bf16.gmra.mxu1 %vm782_vm1, %v1940_v43  ;;  %1559 = vmatprep.mubr.bf16.mxu0 %v2730_v51 }
 0x358   : > { %1600 = vmatprep.mubr.bf16.mxu1 %v2730_v51  ;;  %v1295_v51 = vpop.permute.xlu1 %1294 }
 0x35c   : > { %v1283_v28 = vpop.permute.xlu1 %1282 }
 0x360   : > { %v2624_v47 = vpop.permute.xlu1 %1274 }
 0x364   : > { %v2626_v46 = vpop.permute.xlu1 %1266 }
 0x3fe   : > { %v2612_v39 = vpop.f32.mrf.mxu0 }
 0x3ff   : > { %v2614_v24 = vpop.f32.mrf.mxu1 }
 0x400   : > { %v1365_v9 = vpop.f32.mrf.mxu0 }
 0x401   : > { %v1438_v23 = vpop.f32.mrf.mxu1  ;;  %v2629_v35 = vadd.f32 %v1365_v9, %v2626_v46 }
 0x402   : > { %v2616_v45 = vpop.f32.mrf.mxu0  ;;  %v2632_v42 = vadd.f32 %v1438_v23, %v2626_v46 }
 0x403   : > { %v2618_v6 = vpop.f32.mrf.mxu1 }
 0x404   : > { %v1369_v60 = vpop.f32.mrf.mxu0 }
 0x405   : > { %v1442_v0 = vpop.f32.mrf.mxu1  ;;  %v2637_v25 = vadd.f32 %v1369_v60, %v2634_v2 }
 0x406   : > { %v2620_v13 = vpop.f32.mrf.mxu0  ;;  %v2640_v62 = vadd.f32 %v1442_v0, %v2634_v2 }
 0x407   : > { %v2622_v27 = vpop.f32.mrf.mxu1 }
 0x408   : > { %v1375_v54 = vpop.f32.mrf.mxu0 }
 0x409   : > { %v1448_v16 = vpop.f32.mrf.mxu1  ;;  %v2643_v38 = vadd.f32 %v1375_v54, %v2624_v47 }
 0x40a   : > { %v1377_v59 = vpop.f32.mrf.mxu0  ;;  %v2646_v8 = vadd.f32 %v1448_v16, %v2624_v47 }
 0x40b   : > { %v1450_v12 = vpop.f32.mrf.mxu1  ;;  %v2648_v15 = vadd.f32 %v1377_v59, %v1279_v22 }
 0x40c   : > { %v1379_v14 = vpop.f32.mrf.mxu0  ;;  %v2650_v17 = vadd.f32 %v1450_v12, %v1279_v22 }
 0x40d   : > { %v1452_v30 = vpop.f32.mrf.mxu1  ;;  %v2652_v19 = vadd.f32 %v1379_v14, %v1279_v22 }
 0x40e   : > { %v1383_v18 = vpop.f32.mrf.mxu0  ;;  %v2654_v11 = vadd.f32 %v1452_v30, %v1279_v22 }
 0x40f   : > { %v1456_v32 = vpop.f32.mrf.mxu1  ;;  %v1384_v33 = vadd.f32 %v1383_v18, %v1283_v28 }
 0x410   : > { %v1385_v10 = vpop.f32.mrf.mxu0  ;;  %v1457_v18 = vadd.f32 %v1456_v32, %v1283_v28  ;;  %v1368_v32 = vadd.f32 %v2616_v45, %v2634_v2  ;;  %v1489_v45 = vmax.f32 %v2650_v17, 0.0 }
 0x411   : > { %v1458_v56 = vpop.f32.mrf.mxu1  ;;  %v1386_v48 = vadd.f32 %v1385_v10, %v1283_v28 }
 0x412   : > { %v1387_v53 = vpop.f32.mrf.mxu0  ;;  %v1459_v50 = vadd.f32 %v1458_v56, %v1283_v28 }
 0x413   : > { %v1460_v5 = vpop.f32.mrf.mxu1  ;;  %v1388_v29 = vadd.f32 %v1387_v53, %v1287_v26  ;;  %v1492_v22 = vmax.f32 %v1386_v48, 0.0 }
 0x414   : > { %v1389_v55 = vpop.f32.mrf.mxu0  ;;  %v1461_v44 = vadd.f32 %v1460_v5, %v1287_v26  ;;  %v1494_v56 = vmax.f32 %v1459_v50, 0.0 }
 0x415   : > { %v1462_v40 = vpop.f32.mrf.mxu1  ;;  %v1390_v1 = vadd.f32 %v1389_v55, %v1287_v26 }
 0x416   : > { %v1393_v57 = vpop.f32.mrf.mxu0  ;;  %v1463_v58 = vadd.f32 %v1462_v40, %v1287_v26  ;;  %v1488_v26 = vmax.f32 %v2652_v19, 0.0  ;;  %v1497_v53 = vmax.f32 %v1461_v44, 0.0  ;;  %v1484_v19 = vmax.f32 %v2643_v38, 0.0  ;;  %v1613_v44 = vpop.permute.xlu1 %1612 }
 0x417   : > { %v1466_v31 = vpop.f32.mrf.mxu1  ;;  %v1394_v34 = vadd.f32 %v1393_v57, %v1291_v61  ;;  %v1496_v60 = vmax.f32 %v1390_v1, 0.0  ;;  %v1493_v1 = vmax.f32 %v1457_v18, 0.0  ;;  %v1482_v38 = vmax.f32 %v2640_v62, 0.0 }
 0x418   : > { %v1395_v63 = vpop.f32.mrf.mxu0  ;;  %v1467_v37 = vadd.f32 %v1466_v31, %v1291_v61  ;;  %v1498_v59 = vmax.f32 %v1463_v58, 0.0  ;;  %v1374_v31 = vadd.f32 %v2620_v13, %v2624_v47  ;;  %v1441_v13 = vadd.f32 %v2618_v6, %v2634_v2 }
 0x419   : > { %v1468_v4 = vpop.f32.mrf.mxu1  ;;  %v1396_v52 = vadd.f32 %v1395_v63, %v1291_v61  ;;  %v1499_v12 = vmax.f32 %v1394_v34, 0.0  ;;  %v1490_v63 = vmax.f32 %v2654_v11, 0.0  ;;  %v1486_v11 = vmax.f32 %v2646_v8, 0.0 }
 0x41a   : > { %v1397_v20 = vpop.f32.mrf.mxu0  ;;  %v1469_v41 = vadd.f32 %v1468_v4, %v1291_v61  ;;  %v1501_v55 = vmax.f32 %v1467_v37, 0.0  ;;  %v1495_v61 = vmax.f32 %v1388_v29, 0.0  ;;  %v1491_v4 = vmax.f32 %v1384_v33, 0.0 }
 0x41b   : > { %v1398_v3 = vadd.f32 %v1397_v20, %v1295_v51  ;;  %v1470_v7 = vpop.f32.mrf.mxu1  ;;  %v1500_v0 = vmax.f32 %v1396_v52, 0.0  ;;  %v1519_v28 = vpack.c.bf16 %v1498_v59, %v1494_v56  ;;  %v1447_v20 = vadd.f32 %v2622_v27, %v2624_v47 }
 0x41c   : > { %v1471_v21 = vadd.f32 %v1470_v7, %v1295_v51  ;;  %v1399_v36 = vpop.f32.mrf.mxu0  ;;  %v1502_v14 = vmax.f32 %v1469_v41, 0.0  ;;  %v1487_v33 = vmax.f32 %v2648_v15, 0.0  ;;  %v1516_v52 = vpack.c.bf16 %v1495_v61, %v1491_v4 }
 0x41d   : > { %v1400_v49 = vadd.f32 %v1399_v36, %v1295_v51  ;;  %v1472_v43 = vpop.f32.mrf.mxu1  ;;  %v1503_v9 = vmax.f32 %v1398_v3, 0.0  ;;  %v1480_v3 = vmax.f32 %v2637_v25, 0.0  ;;  %v1513_v7 = vpack.c.bf16 %v1488_v26, %v1484_v19 }
 0x41e   : > { %v1473_v23 = vadd.f32 %v1472_v43, %v1295_v51  ;;  %v1505_v54 = vmax.f32 %v1471_v21, 0.0  ;;  %v1517_v51 = vpack.c.bf16 %v1496_v60, %v1492_v22  ;;  %v1518_v27 = vpack.c.bf16 %v1497_v53, %v1493_v1 }
 0x41f   : > { %v1504_v16 = vmax.f32 %v1400_v49, 0.0  ;;  %v1520_v40 = vpack.c.bf16 %v1503_v9, %v1499_v12  ;;  %v1364_v47 = vadd.f32 %v2612_v39, %v2626_v46  ;;  %v1483_v58 = vmax.f32 %v1374_v31, 0.0 }
 0x420   : > { %v1506_v30 = vmax.f32 %v1473_v23, 0.0  ;;  %v1522_v5 = vpack.c.bf16 %v1505_v54, %v1501_v55  ;;  %v1515_v34 = vpack.c.bf16 %v1490_v63, %v1486_v11  ;;  %v1437_v6 = vadd.f32 %v2614_v24, %v2626_v46 }
 0x421   : > { %v1521_v10 = vpack.c.bf16 %v1504_v16, %v1500_v0  ;;  %v1476_v2 = vmax.f32 %v2629_v35, 0.0  ;;  %v1485_v8 = vmax.f32 %v1447_v20, 0.0  ;;  %v1478_v25 = vmax.f32 %v2632_v42, 0.0  ;;  %v1507_v35 = vld [vmem:[%s2720_s3] sm:$0xf] }
 0x422   : > { %v1523_v57 = vpack.c.bf16 %v1506_v30, %v1502_v14  ;;  %v1479_v15 = vmax.f32 %v1368_v32, 0.0  ;;  %v1512_v17 = vpack.c.bf16 %v1487_v33, %v1483_v58  ;;  %v1481_v41 = vmax.f32 %v1441_v13, 0.0 }
 0x423   : > { %1535 = vmatprep.subr.bf16.mxu0 %v1521_v10  ;;  %v1509_v39 = vpack.c.bf16 %v1480_v3, %v1476_v2  ;;  %v1514_v21 = vpack.c.bf16 %v1489_v45, %v1485_v8  ;;  %v1475_v62 = vmax.f32 %v1364_v47, 0.0  ;;  %v1511_v36 = vpack.c.bf16 %v1482_v38, %v1478_v25 }
 0x424   : > { %1576 = vmatprep.subr.bf16.mxu1 %v1523_v57  ;;  %1536 = vmatpush1.bf16.msra.mxu0 %v1520_v40  ;;  %v1477_v48 = vmax.f32 %v1437_v6, 0.0  ;;  %v2013_v42 = vmov 1966171168   ;;  %v1628_v37 = vlaneseq }
 0x425   : > { %1577 = vmatpush1.bf16.msra.mxu1 %v1522_v5  ;;  %1537 = vmatprep.subr.bf16.mxu0 %v1517_v51  ;;  %v1508_v24 = vpack.c.bf16 %v1479_v15, %v1475_v62  ;;  %v1626_v50 = vunpack.c.l.s4 %v2013_v42 }
 0x426   : > { %1578 = vmatprep.subr.bf16.mxu1 %v1519_v28  ;;  %v1510_v46 = vpack.c.bf16 %v1481_v41, %v1477_v48  ;;  %v1629_v43 = vshrl.u32 %v1628_v37, 7  ;;  %vm1650_vm2 = vcmp.lt.s32.totalorder %v1628_v37, 512 }
 0x427   : > { %v1627_v49 = vunpack.c.0.s8 %v1626_v50 }
 0x428   : > { %1538 = vmatpush1.bf16.msra.mxu0 %v1516_v52 }
 0x429   : > { %1579 = vmatpush1.bf16.msra.mxu1 %v1518_v27  ;;  %1539 = vmatprep.subr.bf16.mxu0 %v1513_v7  ;;  %v1630_v0 = vsub.s32 %v1627_v49, %v1629_v43 }
 0x42a   : > { %1580 = vmatprep.subr.bf16.mxu1 %v1515_v34 }
 0x42c   : > { %1540 = vmatpush1.bf16.msra.mxu0 %v1512_v17 }
 0x42d   : > { %1581 = vmatpush1.bf16.msra.mxu1 %v1514_v21  ;;  %1541 = vmatprep.subr.bf16.mxu0 %v1509_v39 }
 0x42e   : > { %1582 = vmatprep.subr.bf16.mxu1 %v1511_v36 }
 0x430   : > { %1542 = vmatpush1.bf16.msra.mxu0 %v1508_v24 }
 0x431   : > { %1583 = vmatpush1.bf16.msra.mxu1 %v1510_v46 }
 0x433   : > { %1798 = vmatmul.mubr.msk.bf16.vlgmr.msra.gmra.mxu0 %vm782_vm1, %v1507_v35 }
 0x434   : > { %1799 = vmatmul.mubr.msk.bf16.vlgmr.msra.gmra.mxu1 %vm782_vm1, %v1507_v35 }
 0x4f3   : > { %v1561_v29 = vpop.f32.mrf.mxu0 }
 0x4f4   : > { %v1602_v9 = vpop.f32.mrf.mxu1  ;;  %v1615_v54 = vadd.f32 %v1613_v44, %v1561_v29 }
 0x4f5   : > { %v1563_v23 = vpop.f32.mrf.mxu0  ;;  %v1617_v12 = vadd.f32 %v1613_v44, %v1602_v9 }
 0x4f6   : > { %v1604_v60 = vpop.f32.mrf.mxu1  ;;  %v1616_v16 = vadd.f32 %v1613_v44, %v1563_v23 }
 0x4f7   : > { %v1565_v59 = vpop.f32.mrf.mxu0  ;;  %v1618_v14 = vadd.f32 %v1613_v44, %v1604_v60 }
 0x4f8   : > { %v1606_v30 = vpop.f32.mrf.mxu1  ;;  %v1623_v18 = vcombine.low %v1615_v54, %v1616_v16 }
 0x4f9   : > { %v1624_v22 = vcombine.low %v1617_v12, %v1618_v14  ;;  %v1566_v55 = vpop.f32.mrf.mxu0 }
 0x4fa   : > { %v1631_v10 = vrot.slane %v1623_v18, %v1630_v0  ;;  %v1607_v56 = vpop.f32.mrf.mxu1 }
 0x4fb   : > { %v1638_v61 = vrot.slane %v1624_v22, %v1630_v0 }
 0x4fd   : > { %v1639_v40 = vcombine.low %v1631_v10, %v1638_v61 }
 0x4ff   : > { %v1646_v57 = vrot.slane %v1639_v40, %v1630_v0 }
 0x501   : > { %1652 = vst.msk [vmem:[%s230_s11] sm:$0xf] %vm1650_vm2, %v1646_v57 }
 0x502   : > { %1959 = shalt.err (!%p1956_p3)
}
 0x503   : > { %s1960_s26 = scalar_lea.hbm %s1666_s15, 64  ;;  %s1964_s7 = scalar_lea.hbm %s2722_s5, 128 }
 0x504   : > { %p1961_p4 = scmp.ne.s32.totalorder %s1666_s15, %s1960_s26  ;;  %p1965_p9 = scmp.lt.s32.totalorder %s1666_s15, %s2722_s5 }
 0x505   : > { %p1966_p10 = scmp.lt.s32.totalorder %s1964_s7, %s1960_s26 }
 0x506   : > { %p1962_p7 = pnand %p1961_p4, %p2080_p5 }
 0x507   : > { %p1967_p11 = por %p1966_p10, %p1965_p9 }
 0x508   : > { %p1963_p8 = pneg %p1962_p7 }
 0x50a   : > { %p1968_p12 = pnand %p1967_p11, %p1963_p8 }
 0x50c   : > { %1971 = shalt.err (!%p1968_p12)
}
 0x50d   : > { %1870 = dma.vmem_to_hbm [thread:$0]  (%p2080_p5), %s1669_s12, 64, %s1666_s15, %s1654_s16  }
 0x50e PF: > { %p1876_p13 = scmp.ge.s32.totalorder %s2006_s21, 2  ;;  %s1680_s10 = sand.u32 1, %s1994_s18  }
 0x50f   : > { %s1681_s11 = scalar_lea.sflag [#allocation3], %s1680_s10 }
 0x510   : > { %p1873_p0 = pnand %p1876_p13, %p2084_p6 }
 0x512   : > { %p1874_p1 = pneg %p1873_p0 }
 0x514   : > { %1989 = dma.done.wait (%p1874_p1), %s1681_s11, 64  }
 0x515   : > { %1991 = vsyncadd (%p1874_p1), %s1681_s11, 4294967232  ;;  %p15_p2 = scmp.ge.s32.totalorder %s2068_s24, 4   ;;  %s2732_s18 = smov %s1998_s19 }
 0x516   : > { %s2733_s19 = smov %s2002_s20  ;;  %s2734_s20 = smov %s2078_s27 }
 0x517   : > { %s2735_s21 = smov %s2068_s24  ;;  %17 = sbr.rel (!%p15_p2) target bundleno = 3 (0x3), region = 77 }
 0x51c   :  { %1686 = vsyncpa [#allocation3], 1 }
 0x51d   :  { %1688 = vsyncpa [#allocation3 + $0x1], 1 }

</bundles_post_ra>
